<compile_context>
chip_gen: v5e
topology: v5e:2x2
jax: 0.10.0
libtpu: 0.0.40
codegen_flags: <defaults>
</compile_context>

<pallas_src>
import functools
import math

import jax
import jax.numpy as jnp
from jax import lax
from jax.experimental import pallas as pl
from jax.experimental.pallas import tpu as pltpu


# ----------------------------- in-kernel helpers ---------------------------- #

def _layernorm(z, gamma, beta, eps):
    mean = jnp.mean(z, axis=-1, keepdims=True)
    var = jnp.mean(jnp.square(z - mean), axis=-1, keepdims=True)
    return (z - mean) * lax.rsqrt(var + eps) * gamma + beta


def _causal_conv(x, w_ref, bias, k_size):
    """Causal conv1d as per-tap MXU accumulation.

    x: [T, Cin] f32, w_ref: [K, Cin, Cout] (bf16), bias: [1, Cout] f32 -> [T, Cout] f32.
    out[t] = bias + sum_k w[k]^T . x[t - (K-1-k)]   (zero left padding)
    """
    T, cin = x.shape
    # tap k = K-1 is unshifted: use it to seed the accumulator.
    acc = jnp.dot(x.astype(jnp.bfloat16), w_ref[k_size - 1],
                  preferred_element_type=jnp.float32) + bias
    for k in range(k_size - 1):
        shift = k_size - 1 - k
        tap = jnp.concatenate(
            [jnp.zeros((shift, cin), x.dtype), x[:T - shift, :]], axis=0)
        acc = acc + jnp.dot(tap.astype(jnp.bfloat16), w_ref[k],
                            preferred_element_type=jnp.float32)
    return acc


# ----------------------------- fused FFT kernel ----------------------------- #

def _fft_stack_kernel(x_ref, mask_ref, wqkv_ref, wo_ref, w1_ref, w2_ref, vecs_ref,
                      o_ref, xs_ref, cbias_ref, *, n_heads, kernel_size, eps):
    layer = pl.program_id(1)
    mask = mask_ref[...].astype(jnp.float32)                     # [T, 1]

    T, C = xs_ref.shape
    H = n_heads
    dk = C // H
    fch = w1_ref.shape[-1]
    scale = 1.0 / math.sqrt(dk)

    # Layer 0 (per batch tile): seed the residual stream and hoist the causal additive bias.
    @pl.when(layer == 0)
    def _():
        xs_ref[...] = x_ref[...].astype(jnp.float32) * mask
        row = lax.broadcasted_iota(jnp.int32, (T, T), 0)
        col = lax.broadcasted_iota(jnp.int32, (T, T), 1)
        cbias_ref[...] = jnp.where(col <= row, 0.0, -1e4).astype(jnp.float32)

    x = xs_ref[...]                                              # [T, C] f32, VMEM resident

    # packed per-layer vectors: [10, W] f32
    vecs = vecs_ref[...]
    bq, bk, bv = vecs[0:1, :C], vecs[1:2, :C], vecs[2:3, :C]
    bo, g0, be0 = vecs[3:4, :C], vecs[4:5, :C], vecs[5:6, :C]
    b2, g1, be1 = vecs[6:7, :C], vecs[7:8, :C], vecs[8:9, :C]
    b1 = vecs[9:10, :fch]

    # ---------------- causal self-attention (head-batched, bf16 MXU / f32 accum) ----------------
    x_bf = x.astype(jnp.bfloat16)
    q = jnp.dot(x_bf, wqkv_ref[0], preferred_element_type=jnp.float32) + bq   # [T, C]
    k = jnp.dot(x_bf, wqkv_ref[1], preferred_element_type=jnp.float32) + bk
    v = jnp.dot(x_bf, wqkv_ref[2], preferred_element_type=jnp.float32) + bv

    qh = jnp.transpose((q * scale).reshape(T, H, dk), (1, 0, 2))  # [H, T, dk]
    kh = jnp.transpose(k.reshape(T, H, dk), (1, 0, 2))
    vh = jnp.transpose(v.reshape(T, H, dk), (1, 0, 2))

    s = jnp.einsum('htd,hsd->hts', qh.astype(jnp.bfloat16), kh.astype(jnp.bfloat16),
                   preferred_element_type=jnp.float32)            # [H, T, T]
    s = s + cbias_ref[...]                                        # -1e4 on non-causal entries
    m = jnp.max(s, axis=-1, keepdims=True)
    e = jnp.exp(s - m)
    p = e * pl.reciprocal(jnp.sum(e, axis=-1, keepdims=True), approx=True)
    ctx = jnp.einsum('hts,hsd->htd', p.astype(jnp.bfloat16), vh.astype(jnp.bfloat16),
                     preferred_element_type=jnp.float32)          # [H, T, dk]
    ctx = jnp.transpose(ctx, (1, 0, 2)).reshape(T, C)             # fold heads for output proj
    y = jnp.dot(ctx.astype(jnp.bfloat16), wo_ref[...],
                preferred_element_type=jnp.float32) + bo
    x = _layernorm(x + y, g0, be0, eps)

    # ---------------- causal FFN (per-tap convs, fused ReLU & masking) ----------------
    h = _causal_conv(x * mask, w1_ref, b1, kernel_size)           # [T, F]
    h = jnp.maximum(h, 0.0) * mask                                # activation=None -> relu
    y = _causal_conv(h, w2_ref, b2, kernel_size) * mask           # [T, C]
    x = _layernorm(x + y, g1, be1, eps)

    xs_ref[...] = x                                               # carry to next layer

    # only the last layer's result needs to leave VMEM
    @pl.when(layer == pl.num_programs(1) - 1)
    def _():
        o_ref[...] = (x * mask).astype(o_ref.dtype)


# ----------------------------- wrapper / glue -------------------------------- #

def _vmem_limit_bytes():
    cap = 128 * 1024 * 1024
    try:
        cap = int(getattr(pltpu.get_tpu_info(), "vmem_capacity_bytes", cap)) or cap
    except Exception:
        pass
    # ~80% of physical VMEM leaves headroom for double-buffered weight streams and compiler
    # scratch: ~51 MiB on v7x (64 MiB), capped at 112 MiB on v5e/v6e (128 MiB).
    return min(int(cap * 0.8), 112 * 1024 * 1024)


def _stack_layer_params(params):
    ls = params["layers"]
    C = ls[0]["wq"].shape[0]
    F = ls[0]["w1"].shape[2]
    W = max(C, F)
    pad = lambda vv: jnp.pad(vv, (0, W - vv.shape[0]))

    def vec_rows(lp):   # 10 packed per-layer vectors (order matches kernel unpacking)
        return jnp.stack([pad(lp["bq"]), pad(lp["bk"]), pad(lp["bv"]), pad(lp["bo"]),
                          pad(lp["g0"]), pad(lp["be0"]), pad(lp["b2"]),
                          pad(lp["g1"]), pad(lp["be1"]), pad(lp["b1"])])

    stack = lambda f: jnp.stack([f(lp) for lp in ls])
    wdt = jnp.bfloat16   # bf16 MXU operands; halves per-layer weight DMA bytes
    return dict(
        wqkv=stack(lambda lp: jnp.stack([lp["wq"], lp["wk"], lp["wv"]])).astype(wdt),  # [L,3,C,C]
        wo=stack(lambda lp: lp["wo"]).astype(wdt),                                      # [L,C,C]
        w1=stack(lambda lp: lp["w1"]).astype(wdt),                                      # [L,K,C,F]
        w2=stack(lambda lp: lp["w2"]).astype(wdt),                                      # [L,K,F,C]
        vecs=stack(vec_rows).astype(jnp.float32),                                       # [L,10,W]
    )


def fft_forward(x, x_mask, params, n_heads, kernel_size):
    """x: [B, T, C], x_mask: [B, T, 1]  (mirrors FFT.forward, dropout p=0)."""
    B, T, C = x.shape
    L = len(params["layers"])
    sp = _stack_layer_params(params)
    K = kernel_size
    F = sp["w1"].shape[-1]
    W = sp["vecs"].shape[-1]

    act = lambda b, l: (b, 0, 0)          # activations / mask / output: per batch tile
    perl3 = lambda b, l: (l, 0, 0)        # per-layer weights streamed along the layer axis
    perl4 = lambda b, l: (l, 0, 0, 0)

    kern = functools.partial(_fft_stack_kernel, n_heads=n_heads,
                             kernel_size=kernel_size, eps=1e-5)
    in_specs = [
        pl.BlockSpec((None, T, C), act),            # x           (batch dim squeezed)
        pl.BlockSpec((None, T, 1), act),            # x_mask
        pl.BlockSpec((None, 3, C, C), perl4),       # wq/wk/wv    (bf16)
        pl.BlockSpec((None, C, C), perl3),          # wo          (bf16)
        pl.BlockSpec((None, K, C, F), perl4),       # conv1 taps  (bf16)
        pl.BlockSpec((None, K, F, C), perl4),       # conv2 taps  (bf16)
        pl.BlockSpec((None, 10, W), perl3),         # packed biases / LN gains (f32)
    ]
    return pl.pallas_call(
        kern,
        out_shape=jax.ShapeDtypeStruct((B, T, C), x.dtype),
        grid_spec=pltpu.PrefetchScalarGridSpec(
            num_scalar_prefetch=0,
            grid=(B, L),                              # batch (parallel) x layer (sequential)
            in_specs=in_specs,
            out_specs=pl.BlockSpec((None, T, C), act),
            scratch_shapes=[pltpu.VMEM((T, C), jnp.float32),   # layer-resident residual stream
                            pltpu.VMEM((T, T), jnp.float32)],  # hoisted causal additive bias
        ),
        compiler_params=pltpu.CompilerParams(
            dimension_semantics=("parallel", "arbitrary"),
            vmem_limit_bytes=_vmem_limit_bytes(),
        ),
    )(x, x_mask, sp["wqkv"], sp["wo"], sp["w1"], sp["w2"], sp["vecs"])


# ----------------------------- pure-JAX reference ---------------------------- #

def _fft_reference(x, x_mask, params, n_heads, kernel_size):
    B, T, C = x.shape
    dk = C // n_heads
    causal = jnp.tril(jnp.ones((T, T), bool))

    def ln(z, g, b, eps=1e-5):
        mu = jnp.mean(z, -1, keepdims=True)
        var = jnp.mean(jnp.square(z - mu), -1, keepdims=True)
        return (z - mu) * lax.rsqrt(var + eps) * g + b

    def conv(h, w, b):
        K = w.shape[0]
        hp = jnp.pad(h, ((0, 0), (K - 1, 0), (0, 0)))
        out = b
        for k in range(K):
            out = out + jnp.einsum('btc,cf->btf', hp[:, k:k + T, :], w[k])
        return out

    x = x * x_mask
    for lp in params["layers"]:
        q = jnp.einsum('btc,cd->btd', x, lp["wq"]) + lp["bq"]
        k = jnp.einsum('btc,cd->btd', x, lp["wk"]) + lp["bk"]
        v = jnp.einsum('btc,cd->btd', x, lp["wv"]) + lp["bv"]
        qh = q.reshape(B, T, n_heads, dk)
        kh = k.reshape(B, T, n_heads, dk)
        vh = v.reshape(B, T, n_heads, dk)
        s = jnp.einsum('bthd,bshd->bhts', qh / math.sqrt(dk), kh)
        s = jnp.where(causal[None, None], s, -1e4)
        p = jax.nn.softmax(s, axis=-1)
        ctx = jnp.einsum('bhts,bshd->bthd', p, vh).reshape(B, T, C)
        y = jnp.einsum('btc,cd->btd', ctx, lp["wo"]) + lp["bo"]
        x = ln(x + y, lp["g0"], lp["be0"])
        h = jax.nn.relu(conv(x * x_mask, lp["w1"], lp["b1"]))
        h = conv(h * x_mask, lp["w2"], lp["b2"])
        x = ln(x + h * x_mask, lp["g1"], lp["be1"])
    return x * x_mask


# ----------------------------- parameter init -------------------------------- #

def init_params(key, hidden, filter_ch, n_layers, kernel_size):
    layers = []
    for _ in range(n_layers):
        key, kq, kv, ko, kbq, kbv, kbo, kw1, kb1, kw2, kb2 = jax.random.split(key, 11)
        lim_qkv = math.sqrt(6.0 / (hidden + hidden))     # xavier_uniform
        wq = jax.random.uniform(kq, (hidden, hidden), jnp.float32, -lim_qkv, lim_qkv)
        bq = jax.random.uniform(kbq, (hidden,), jnp.float32, -0.1, 0.1)
        wk, bk = wq, bq                                  # proximal_init=True copies q -> k
        wv = jax.random.uniform(kv, (hidden, hidden), jnp.float32, -lim_qkv, lim_qkv)
        bv = jax.random.uniform(kbv, (hidden,), jnp.float32, -0.1, 0.1)
        wo = jax.random.uniform(ko, (hidden, hidden), jnp.float32, -0.1, 0.1)
        bo = jax.random.uniform(kbo, (hidden,), jnp.float32, -0.1, 0.1)
        lim1 = 1.0 / math.sqrt(hidden * kernel_size)
        w1 = jax.random.uniform(kw1, (kernel_size, hidden, filter_ch), jnp.float32, -lim1, lim1)
        b1 = jax.random.uniform(kb1, (filter_ch,), jnp.float32, -lim1, lim1)
        lim2 = 1.0 / math.sqrt(filter_ch * kernel_size)
        w2 = jax.random.uniform(kw2, (kernel_size, filter_ch, hidden), jnp.float32, -lim2, lim2)
        b2 = jax.random.uniform(kb2, (hidden,), jnp.float32, -lim2, lim2)
        layers.append(dict(
            wq=wq, bq=bq, wk=wk, bk=bk, wv=wv, bv=bv, wo=wo, bo=bo,
            g0=jnp.ones((hidden,), jnp.float32), be0=jnp.zeros((hidden,), jnp.float32),
            w1=w1, b1=b1, w2=w2, b2=b2,
            g1=jnp.ones((hidden,), jnp.float32), be1=jnp.zeros((hidden,), jnp.float32),
        ))
    return {"layers": layers}


# --------------------------------- main --------------------------------------- #

if __name__ == "__main__":
    B, T = 2, 8
    hidden_channels = 32
    filter_channels = 64
    n_heads = 4
    n_layers = 2
    kernel_size = 3
    # TODO(synk): Dropout (p_dropout=0.0) is identity at these defaults; no RNG dropout kernel.

    key = jax.random.PRNGKey(0)
    key, kx = jax.random.split(key)
    x = jax.random.normal(kx, (B, T, hidden_channels), jnp.float32)   # [B, T, C]
    x_mask = jnp.ones((B, T, 1), jnp.float32).at[1, 6:, :].set(0.0)   # ragged second sequence

    params = init_params(key, hidden_channels, filter_channels, n_layers, kernel_size)

    out = fft_forward(x, x_mask, params, n_heads, kernel_size)
    out = jax.block_until_ready(out)
    ref = _fft_reference(x, x_mask, params, n_heads, kernel_size)

    assert out.shape == (B, T, hidden_channels)
    assert bool(jnp.all(jnp.isfinite(out)))
    err = float(jnp.max(jnp.abs(out - ref)))
    # bf16 MXU operands (f32 accumulation / LayerNorm / softmax) trade ~1e-2-scale abs deviation
    # vs the pure-f32 reference over 2 layers; tolerance loosened accordingly.
    assert err < 1e-1, f"max abs err vs reference = {err}"
    print("KERNEL_OK")
</pallas_src>

<mosaic_0001>
module attributes {stable_mosaic.version = 11 : i64} {
  func.func @_fft_stack_kernel(%arg0: i32, %arg1: i32, %arg2: memref<1x8x32xf32, #tpu.memory_space<vmem>>, %arg3: memref<1x8x1xf32, #tpu.memory_space<vmem>>, %arg4: memref<1x3x32x32xbf16, #tpu.memory_space<vmem>>, %arg5: memref<1x32x32xbf16, #tpu.memory_space<vmem>>, %arg6: memref<1x3x32x64xbf16, #tpu.memory_space<vmem>>, %arg7: memref<1x3x64x32xbf16, #tpu.memory_space<vmem>>, %arg8: memref<1x10x64xf32, #tpu.memory_space<vmem>>, %arg9: memref<1x8x32xf32, #tpu.memory_space<vmem>>, %arg10: memref<8x32xf32, #tpu.memory_space<vmem>>, %arg11: memref<8x8xf32, #tpu.memory_space<vmem>>) attributes {dimension_semantics = [#tpu.dimension_semantics<parallel>, #tpu.dimension_semantics<arbitrary>], iteration_bounds = array<i64: 2, 2>, scalar_prefetch = 0 : i64, scratch_operands = 2 : i64, tpu.core_type = #tpu.core_type<tc>, window_params = [{transform_indices = @transform_0, window_bounds = array<i64: 1, 8, 32>}, {transform_indices = @transform_1, window_bounds = array<i64: 1, 8, 1>}, {transform_indices = @transform_2, window_bounds = array<i64: 1, 3, 32, 32>}, {transform_indices = @transform_3, window_bounds = array<i64: 1, 32, 32>}, {transform_indices = @transform_4, window_bounds = array<i64: 1, 3, 32, 64>}, {transform_indices = @transform_5, window_bounds = array<i64: 1, 3, 64, 32>}, {transform_indices = @transform_6, window_bounds = array<i64: 1, 10, 64>}, {transform_indices = @transform_7, window_bounds = array<i64: 1, 8, 32>}]} {
    %c0 = arith.constant 0 : index
    %c0_0 = arith.constant 0 : index
    %c0_1 = arith.constant 0 : index
    %0 = vector.load %arg3[%c0, %c0_0, %c0_1] : memref<1x8x1xf32, #tpu.memory_space<vmem>>, vector<1x8x1xf32>
    %1 = vector.shape_cast %0 : vector<1x8x1xf32> to vector<8x1xf32>
    %c0_i32 = arith.constant 0 : i32
    %2 = arith.cmpi eq, %arg1, %c0_i32 : i32
    %3 = arith.extui %2 : i1 to i32
    %c0_i32_2 = arith.constant 0 : i32
    %4 = arith.cmpi ne, %3, %c0_i32_2 : i32
    scf.if %4 {
      %c0_79 = arith.constant 0 : index
      %c0_80 = arith.constant 0 : index
      %c0_81 = arith.constant 0 : index
      %172 = vector.load %arg2[%c0_79, %c0_80, %c0_81] : memref<1x8x32xf32, #tpu.memory_space<vmem>>, vector<1x8x32xf32>
      %173 = vector.shape_cast %172 : vector<1x8x32xf32> to vector<8x32xf32>
      %174 = vector.broadcast %1 : vector<8x1xf32> to vector<8x32xf32>
      %175 = arith.mulf %173, %174 : vector<8x32xf32>
      %c0_82 = arith.constant 0 : index
      %c0_83 = arith.constant 0 : index
      %176 = vector.load %arg10[%c0_82, %c0_83] : memref<8x32xf32, #tpu.memory_space<vmem>>, vector<8x32xf32>
      tpu.vector_store %arg10[%c0_82, %c0_83], %175 {strides = array<i32>} : memref<8x32xf32, #tpu.memory_space<vmem>>, vector<8x32xf32>,
      %177 = tpu.iota {dimensions = array<i32: 0>} : vector<8x8xi32>
      %178 = tpu.iota {dimensions = array<i32: 1>} : vector<8x8xi32>
      %179 = arith.cmpi sle, %178, %177 : vector<8x8xi32>
      %cst_84 = arith.constant 0.000000e+00 : f32
      %cst_85 = arith.constant -1.000000e+04 : f32
      %180 = vector.broadcast %cst_84 : f32 to vector<8x8xf32>
      %181 = vector.broadcast %cst_85 : f32 to vector<8x8xf32>
      %182 = arith.select %179, %180, %181 : vector<8x8xi1>, vector<8x8xf32>
      %c0_86 = arith.constant 0 : index
      %c0_87 = arith.constant 0 : index
      %183 = vector.load %arg11[%c0_86, %c0_87] : memref<8x8xf32, #tpu.memory_space<vmem>>, vector<8x8xf32>
      tpu.vector_store %arg11[%c0_86, %c0_87], %182 {strides = array<i32>} : memref<8x8xf32, #tpu.memory_space<vmem>>, vector<8x8xf32>,
    } else {
    }
    %c0_3 = arith.constant 0 : index
    %c0_4 = arith.constant 0 : index
    %5 = vector.load %arg10[%c0_3, %c0_4] : memref<8x32xf32, #tpu.memory_space<vmem>>, vector<8x32xf32>
    %c0_5 = arith.constant 0 : index
    %c0_6 = arith.constant 0 : index
    %c0_7 = arith.constant 0 : index
    %6 = vector.load %arg8[%c0_5, %c0_6, %c0_7] : memref<1x10x64xf32, #tpu.memory_space<vmem>>, vector<1x10x64xf32>
    %7 = vector.shape_cast %6 : vector<1x10x64xf32> to vector<10x64xf32>
    %8 = vector.extract_strided_slice %7 {offsets = [0, 0], sizes = [1, 32], strides = [1, 1]} : vector<10x64xf32> to vector<1x32xf32>
    %9 = vector.extract_strided_slice %7 {offsets = [1, 0], sizes = [1, 32], strides = [1, 1]} : vector<10x64xf32> to vector<1x32xf32>
    %10 = vector.extract_strided_slice %7 {offsets = [2, 0], sizes = [1, 32], strides = [1, 1]} : vector<10x64xf32> to vector<1x32xf32>
    %11 = vector.extract_strided_slice %7 {offsets = [3, 0], sizes = [1, 32], strides = [1, 1]} : vector<10x64xf32> to vector<1x32xf32>
    %12 = vector.extract_strided_slice %7 {offsets = [4, 0], sizes = [1, 32], strides = [1, 1]} : vector<10x64xf32> to vector<1x32xf32>
    %13 = vector.extract_strided_slice %7 {offsets = [5, 0], sizes = [1, 32], strides = [1, 1]} : vector<10x64xf32> to vector<1x32xf32>
    %14 = vector.extract_strided_slice %7 {offsets = [6, 0], sizes = [1, 32], strides = [1, 1]} : vector<10x64xf32> to vector<1x32xf32>
    %15 = vector.extract_strided_slice %7 {offsets = [7, 0], sizes = [1, 32], strides = [1, 1]} : vector<10x64xf32> to vector<1x32xf32>
    %16 = vector.extract_strided_slice %7 {offsets = [8, 0], sizes = [1, 32], strides = [1, 1]} : vector<10x64xf32> to vector<1x32xf32>
    %17 = vector.extract_strided_slice %7 {offsets = [9, 0], sizes = [1, 64], strides = [1, 1]} : vector<10x64xf32> to vector<1x64xf32>
    %18 = arith.truncf %5 : vector<8x32xf32> to vector<8x32xbf16>
    %c0_8 = arith.constant 0 : index
    %c0_9 = arith.constant 0 : index
    %c0_10 = arith.constant 0 : index
    %c0_11 = arith.constant 0 : index
    %19 = vector.load %arg4[%c0_8, %c0_9, %c0_10, %c0_11] : memref<1x3x32x32xbf16, #tpu.memory_space<vmem>>, vector<1x1x32x32xbf16>
    %20 = vector.shape_cast %19 : vector<1x1x32x32xbf16> to vector<32x32xbf16>
    %cst = arith.constant dense<0.000000e+00> : vector<8x32xf32>
    %21 = tpu.matmul %18, %20, %cst {dimension_numbers = #tpu.dot_dimension_numbers<[1], [0], [0], [1], [0, 0, 1, 1], [], []>} : vector<8x32xbf16>, vector<32x32xbf16>, vector<8x32xf32> -> vector<8x32xf32>
    %22 = vector.broadcast %8 : vector<1x32xf32> to vector<8x32xf32>
    %23 = arith.addf %21, %22 : vector<8x32xf32>
    %c0_12 = arith.constant 0 : index
    %c1 = arith.constant 1 : index
    %c0_13 = arith.constant 0 : index
    %c0_14 = arith.constant 0 : index
    %24 = vector.load %arg4[%c0_12, %c1, %c0_13, %c0_14] : memref<1x3x32x32xbf16, #tpu.memory_space<vmem>>, vector<1x1x32x32xbf16>
    %25 = vector.shape_cast %24 : vector<1x1x32x32xbf16> to vector<32x32xbf16>
    %cst_15 = arith.constant dense<0.000000e+00> : vector<8x32xf32>
    %26 = tpu.matmul %18, %25, %cst_15 {dimension_numbers = #tpu.dot_dimension_numbers<[1], [0], [0], [1], [0, 0, 1, 1], [], []>} : vector<8x32xbf16>, vector<32x32xbf16>, vector<8x32xf32> -> vector<8x32xf32>
    %27 = vector.broadcast %9 : vector<1x32xf32> to vector<8x32xf32>
    %28 = arith.addf %26, %27 : vector<8x32xf32>
    %c0_16 = arith.constant 0 : index
    %c2 = arith.constant 2 : index
    %c0_17 = arith.constant 0 : index
    %c0_18 = arith.constant 0 : index
    %29 = vector.load %arg4[%c0_16, %c2, %c0_17, %c0_18] : memref<1x3x32x32xbf16, #tpu.memory_space<vmem>>, vector<1x1x32x32xbf16>
    %30 = vector.shape_cast %29 : vector<1x1x32x32xbf16> to vector<32x32xbf16>
    %cst_19 = arith.constant dense<0.000000e+00> : vector<8x32xf32>
    %31 = tpu.matmul %18, %30, %cst_19 {dimension_numbers = #tpu.dot_dimension_numbers<[1], [0], [0], [1], [0, 0, 1, 1], [], []>} : vector<8x32xbf16>, vector<32x32xbf16>, vector<8x32xf32> -> vector<8x32xf32>
    %32 = vector.broadcast %10 : vector<1x32xf32> to vector<8x32xf32>
    %33 = arith.addf %31, %32 : vector<8x32xf32>
    %cst_20 = arith.constant 0.353553385 : f32
    %34 = vector.broadcast %cst_20 : f32 to vector<8x32xf32>
    %35 = arith.mulf %23, %34 : vector<8x32xf32>
    %36 = vector.shape_cast %35 : vector<8x32xf32> to vector<8x4x8xf32>
    %37 = tpu.transpose %36, [1, 0, 2] : vector<8x4x8xf32> -> vector<4x8x8xf32>
    %38 = vector.shape_cast %28 : vector<8x32xf32> to vector<8x4x8xf32>
    %39 = tpu.transpose %38, [1, 0, 2] : vector<8x4x8xf32> -> vector<4x8x8xf32>
    %40 = vector.shape_cast %33 : vector<8x32xf32> to vector<8x4x8xf32>
    %41 = tpu.transpose %40, [1, 0, 2] : vector<8x4x8xf32> -> vector<4x8x8xf32>
    %42 = arith.truncf %37 : vector<4x8x8xf32> to vector<4x8x8xbf16>
    %43 = arith.truncf %39 : vector<4x8x8xf32> to vector<4x8x8xbf16>
    "tpu.trace_start"() <{level = 10 : i32, message = "htd,hsd->hts"}> : () -> ()
    %cst_21 = arith.constant dense<0.000000e+00> : vector<4x8x8xf32>
    %44 = tpu.matmul %42, %43, %cst_21 {dimension_numbers = #tpu.dot_dimension_numbers<[2], [2], [1], [1], [0, 0, 0, 1, 1, 1], [0], [0]>} : vector<4x8x8xbf16>, vector<4x8x8xbf16>, vector<4x8x8xf32> -> vector<4x8x8xf32>
    "tpu.trace_stop"() : () -> ()
    %c0_22 = arith.constant 0 : index
    %c0_23 = arith.constant 0 : index
    %45 = vector.load %arg11[%c0_22, %c0_23] : memref<8x8xf32, #tpu.memory_space<vmem>>, vector<8x8xf32>
    %46 = vector.shape_cast %45 : vector<8x8xf32> to vector<1x8x8xf32>
    %47 = vector.broadcast %46 : vector<1x8x8xf32> to vector<4x8x8xf32>
    %48 = arith.addf %44, %47 : vector<4x8x8xf32>
    %cst_24 = arith.constant dense<0xFF800000> : vector<4x8xf32>
    %49 = vector.multi_reduction <maximumf>, %48, %cst_24 [2] : vector<4x8x8xf32> to vector<4x8xf32>
    %50 = vector.shape_cast %49 : vector<4x8xf32> to vector<4x8x1xf32>
    %51 = vector.broadcast %50 : vector<4x8x1xf32> to vector<4x8x8xf32>
    %52 = arith.subf %48, %51 : vector<4x8x8xf32>
    %53 = math.exp %52 : vector<4x8x8xf32>
    %cst_25 = arith.constant dense<0.000000e+00> : vector<4x8xf32>
    %54 = vector.multi_reduction <add>, %53, %cst_25 [2] : vector<4x8x8xf32> to vector<4x8xf32>
    %55 = vector.shape_cast %54 : vector<4x8xf32> to vector<4x8x1xf32>
    %56 = tpu.reciprocal %55 {approx = true} : vector<4x8x1xf32> -> vector<4x8x1xf32>
    %57 = vector.broadcast %56 : vector<4x8x1xf32> to vector<4x8x8xf32>
    %58 = arith.mulf %53, %57 : vector<4x8x8xf32>
    %59 = arith.truncf %58 : vector<4x8x8xf32> to vector<4x8x8xbf16>
    %60 = arith.truncf %41 : vector<4x8x8xf32> to vector<4x8x8xbf16>
    "tpu.trace_start"() <{level = 10 : i32, message = "hts,hsd->htd"}> : () -> ()
    %cst_26 = arith.constant dense<0.000000e+00> : vector<4x8x8xf32>
    %61 = tpu.matmul %59, %60, %cst_26 {dimension_numbers = #tpu.dot_dimension_numbers<[2], [1], [1], [2], [0, 0, 0, 1, 1, 2], [0], [0]>} : vector<4x8x8xbf16>, vector<4x8x8xbf16>, vector<4x8x8xf32> -> vector<4x8x8xf32>
    "tpu.trace_stop"() : () -> ()
    %62 = tpu.transpose %61, [1, 0, 2] : vector<4x8x8xf32> -> vector<8x4x8xf32>
    %63 = vector.shape_cast %62 : vector<8x4x8xf32> to vector<8x32xf32>
    %64 = arith.truncf %63 : vector<8x32xf32> to vector<8x32xbf16>
    %c0_27 = arith.constant 0 : index
    %c0_28 = arith.constant 0 : index
    %c0_29 = arith.constant 0 : index
    %65 = vector.load %arg5[%c0_27, %c0_28, %c0_29] : memref<1x32x32xbf16, #tpu.memory_space<vmem>>, vector<1x32x32xbf16>
    %66 = vector.shape_cast %65 : vector<1x32x32xbf16> to vector<32x32xbf16>
    %cst_30 = arith.constant dense<0.000000e+00> : vector<8x32xf32>
    %67 = tpu.matmul %64, %66, %cst_30 {dimension_numbers = #tpu.dot_dimension_numbers<[1], [0], [0], [1], [0, 0, 1, 1], [], []>} : vector<8x32xbf16>, vector<32x32xbf16>, vector<8x32xf32> -> vector<8x32xf32>
    %68 = vector.broadcast %11 : vector<1x32xf32> to vector<8x32xf32>
    %69 = arith.addf %67, %68 : vector<8x32xf32>
    %70 = arith.addf %5, %69 : vector<8x32xf32>
    %cst_31 = arith.constant dense<0.000000e+00> : vector<8xf32>
    %71 = vector.multi_reduction <add>, %70, %cst_31 [1] : vector<8x32xf32> to vector<8xf32>
    %72 = vector.shape_cast %71 : vector<8xf32> to vector<8x1xf32>
    %cst_32 = arith.constant 3.200000e+01 : f32
    %73 = vector.broadcast %cst_32 : f32 to vector<8x1xf32>
    %74 = arith.divf %72, %73 : vector<8x1xf32>
    %75 = vector.broadcast %74 : vector<8x1xf32> to vector<8x32xf32>
    %76 = arith.subf %70, %75 : vector<8x32xf32>
    %77 = arith.mulf %76, %76 : vector<8x32xf32>
    %cst_33 = arith.constant dense<0.000000e+00> : vector<8xf32>
    %78 = vector.multi_reduction <add>, %77, %cst_33 [1] : vector<8x32xf32> to vector<8xf32>
    %79 = vector.shape_cast %78 : vector<8xf32> to vector<8x1xf32>
    %cst_34 = arith.constant 3.200000e+01 : f32
    %80 = vector.broadcast %cst_34 : f32 to vector<8x1xf32>
    %81 = arith.divf %79, %80 : vector<8x1xf32>
    %82 = vector.broadcast %74 : vector<8x1xf32> to vector<8x32xf32>
    %83 = arith.subf %70, %82 : vector<8x32xf32>
    %cst_35 = arith.constant 9.99999974E-6 : f32
    %84 = vector.broadcast %cst_35 : f32 to vector<8x1xf32>
    %85 = arith.addf %81, %84 : vector<8x1xf32>
    %86 = math.rsqrt %85 : vector<8x1xf32>
    %87 = vector.broadcast %86 : vector<8x1xf32> to vector<8x32xf32>
    %88 = arith.mulf %83, %87 : vector<8x32xf32>
    %89 = vector.broadcast %12 : vector<1x32xf32> to vector<8x32xf32>
    %90 = arith.mulf %88, %89 : vector<8x32xf32>
    %91 = vector.broadcast %13 : vector<1x32xf32> to vector<8x32xf32>
    %92 = arith.addf %90, %91 : vector<8x32xf32>
    %93 = vector.broadcast %1 : vector<8x1xf32> to vector<8x32xf32>
    %94 = arith.mulf %92, %93 : vector<8x32xf32>
    %95 = arith.truncf %94 : vector<8x32xf32> to vector<8x32xbf16>
    %c0_36 = arith.constant 0 : index
    %c2_37 = arith.constant 2 : index
    %c0_38 = arith.constant 0 : index
    %c0_39 = arith.constant 0 : index
    %96 = vector.load %arg6[%c0_36, %c2_37, %c0_38, %c0_39] : memref<1x3x32x64xbf16, #tpu.memory_space<vmem>>, vector<1x1x32x64xbf16>
    %97 = vector.shape_cast %96 : vector<1x1x32x64xbf16> to vector<32x64xbf16>
    %cst_40 = arith.constant dense<0.000000e+00> : vector<8x64xf32>
    %98 = tpu.matmul %95, %97, %cst_40 {dimension_numbers = #tpu.dot_dimension_numbers<[1], [0], [0], [1], [0, 0, 1, 1], [], []>} : vector<8x32xbf16>, vector<32x64xbf16>, vector<8x64xf32> -> vector<8x64xf32>
    %99 = vector.broadcast %17 : vector<1x64xf32> to vector<8x64xf32>
    %100 = arith.addf %98, %99 : vector<8x64xf32>
    %cst_41 = arith.constant 0.000000e+00 : f32
    %101 = vector.broadcast %cst_41 : f32 to vector<2x32xf32>
    %102 = vector.extract_strided_slice %94 {offsets = [0, 0], sizes = [6, 32], strides = [1, 1]} : vector<8x32xf32> to vector<6x32xf32>
    %103 = tpu.concatenate %101, %102 in 0 : vector<2x32xf32>, vector<6x32xf32> -> vector<8x32xf32>
    %104 = arith.truncf %103 : vector<8x32xf32> to vector<8x32xbf16>
    %c0_42 = arith.constant 0 : index
    %c0_43 = arith.constant 0 : index
    %c0_44 = arith.constant 0 : index
    %c0_45 = arith.constant 0 : index
    %105 = vector.load %arg6[%c0_42, %c0_43, %c0_44, %c0_45] : memref<1x3x32x64xbf16, #tpu.memory_space<vmem>>, vector<1x1x32x64xbf16>
    %106 = vector.shape_cast %105 : vector<1x1x32x64xbf16> to vector<32x64xbf16>
    %cst_46 = arith.constant dense<0.000000e+00> : vector<8x64xf32>
    %107 = tpu.matmul %104, %106, %cst_46 {dimension_numbers = #tpu.dot_dimension_numbers<[1], [0], [0], [1], [0, 0, 1, 1], [], []>} : vector<8x32xbf16>, vector<32x64xbf16>, vector<8x64xf32> -> vector<8x64xf32>
    %108 = arith.addf %100, %107 : vector<8x64xf32>
    %cst_47 = arith.constant 0.000000e+00 : f32
    %109 = vector.broadcast %cst_47 : f32 to vector<1x32xf32>
    %110 = vector.extract_strided_slice %94 {offsets = [0, 0], sizes = [7, 32], strides = [1, 1]} : vector<8x32xf32> to vector<7x32xf32>
    %111 = tpu.concatenate %109, %110 in 0 : vector<1x32xf32>, vector<7x32xf32> -> vector<8x32xf32>
    %112 = arith.truncf %111 : vector<8x32xf32> to vector<8x32xbf16>
    %c0_48 = arith.constant 0 : index
    %c1_49 = arith.constant 1 : index
    %c0_50 = arith.constant 0 : index
    %c0_51 = arith.constant 0 : index
    %113 = vector.load %arg6[%c0_48, %c1_49, %c0_50, %c0_51] : memref<1x3x32x64xbf16, #tpu.memory_space<vmem>>, vector<1x1x32x64xbf16>
    %114 = vector.shape_cast %113 : vector<1x1x32x64xbf16> to vector<32x64xbf16>
    %cst_52 = arith.constant dense<0.000000e+00> : vector<8x64xf32>
    %115 = tpu.matmul %112, %114, %cst_52 {dimension_numbers = #tpu.dot_dimension_numbers<[1], [0], [0], [1], [0, 0, 1, 1], [], []>} : vector<8x32xbf16>, vector<32x64xbf16>, vector<8x64xf32> -> vector<8x64xf32>
    %116 = arith.addf %108, %115 : vector<8x64xf32>
    %cst_53 = arith.constant 0.000000e+00 : f32
    %117 = vector.broadcast %cst_53 : f32 to vector<8x64xf32>
    %118 = arith.maximumf %116, %117 : vector<8x64xf32>
    %119 = vector.broadcast %1 : vector<8x1xf32> to vector<8x64xf32>
    %120 = arith.mulf %118, %119 : vector<8x64xf32>
    %121 = arith.truncf %120 : vector<8x64xf32> to vector<8x64xbf16>
    %c0_54 = arith.constant 0 : index
    %c2_55 = arith.constant 2 : index
    %c0_56 = arith.constant 0 : index
    %c0_57 = arith.constant 0 : index
    %122 = vector.load %arg7[%c0_54, %c2_55, %c0_56, %c0_57] : memref<1x3x64x32xbf16, #tpu.memory_space<vmem>>, vector<1x1x64x32xbf16>
    %123 = vector.shape_cast %122 : vector<1x1x64x32xbf16> to vector<64x32xbf16>
    %cst_58 = arith.constant dense<0.000000e+00> : vector<8x32xf32>
    %124 = tpu.matmul %121, %123, %cst_58 {dimension_numbers = #tpu.dot_dimension_numbers<[1], [0], [0], [1], [0, 0, 1, 1], [], []>} : vector<8x64xbf16>, vector<64x32xbf16>, vector<8x32xf32> -> vector<8x32xf32>
    %125 = vector.broadcast %14 : vector<1x32xf32> to vector<8x32xf32>
    %126 = arith.addf %124, %125 : vector<8x32xf32>
    %cst_59 = arith.constant 0.000000e+00 : f32
    %127 = vector.broadcast %cst_59 : f32 to vector<2x64xf32>
    %128 = vector.extract_strided_slice %120 {offsets = [0, 0], sizes = [6, 64], strides = [1, 1]} : vector<8x64xf32> to vector<6x64xf32>
    %129 = tpu.concatenate %127, %128 in 0 : vector<2x64xf32>, vector<6x64xf32> -> vector<8x64xf32>
    %130 = arith.truncf %129 : vector<8x64xf32> to vector<8x64xbf16>
    %c0_60 = arith.constant 0 : index
    %c0_61 = arith.constant 0 : index
    %c0_62 = arith.constant 0 : index
    %c0_63 = arith.constant 0 : index
    %131 = vector.load %arg7[%c0_60, %c0_61, %c0_62, %c0_63] : memref<1x3x64x32xbf16, #tpu.memory_space<vmem>>, vector<1x1x64x32xbf16>
    %132 = vector.shape_cast %131 : vector<1x1x64x32xbf16> to vector<64x32xbf16>
    %cst_64 = arith.constant dense<0.000000e+00> : vector<8x32xf32>
    %133 = tpu.matmul %130, %132, %cst_64 {dimension_numbers = #tpu.dot_dimension_numbers<[1], [0], [0], [1], [0, 0, 1, 1], [], []>} : vector<8x64xbf16>, vector<64x32xbf16>, vector<8x32xf32> -> vector<8x32xf32>
    %134 = arith.addf %126, %133 : vector<8x32xf32>
    %cst_65 = arith.constant 0.000000e+00 : f32
    %135 = vector.broadcast %cst_65 : f32 to vector<1x64xf32>
    %136 = vector.extract_strided_slice %120 {offsets = [0, 0], sizes = [7, 64], strides = [1, 1]} : vector<8x64xf32> to vector<7x64xf32>
    %137 = tpu.concatenate %135, %136 in 0 : vector<1x64xf32>, vector<7x64xf32> -> vector<8x64xf32>
    %138 = arith.truncf %137 : vector<8x64xf32> to vector<8x64xbf16>
    %c0_66 = arith.constant 0 : index
    %c1_67 = arith.constant 1 : index
    %c0_68 = arith.constant 0 : index
    %c0_69 = arith.constant 0 : index
    %139 = vector.load %arg7[%c0_66, %c1_67, %c0_68, %c0_69] : memref<1x3x64x32xbf16, #tpu.memory_space<vmem>>, vector<1x1x64x32xbf16>
    %140 = vector.shape_cast %139 : vector<1x1x64x32xbf16> to vector<64x32xbf16>
    %cst_70 = arith.constant dense<0.000000e+00> : vector<8x32xf32>
    %141 = tpu.matmul %138, %140, %cst_70 {dimension_numbers = #tpu.dot_dimension_numbers<[1], [0], [0], [1], [0, 0, 1, 1], [], []>} : vector<8x64xbf16>, vector<64x32xbf16>, vector<8x32xf32> -> vector<8x32xf32>
    %142 = arith.addf %134, %141 : vector<8x32xf32>
    %143 = vector.broadcast %1 : vector<8x1xf32> to vector<8x32xf32>
    %144 = arith.mulf %142, %143 : vector<8x32xf32>
    %145 = arith.addf %92, %144 : vector<8x32xf32>
    %cst_71 = arith.constant dense<0.000000e+00> : vector<8xf32>
    %146 = vector.multi_reduction <add>, %145, %cst_71 [1] : vector<8x32xf32> to vector<8xf32>
    %147 = vector.shape_cast %146 : vector<8xf32> to vector<8x1xf32>
    %cst_72 = arith.constant 3.200000e+01 : f32
    %148 = vector.broadcast %cst_72 : f32 to vector<8x1xf32>
    %149 = arith.divf %147, %148 : vector<8x1xf32>
    %150 = vector.broadcast %149 : vector<8x1xf32> to vector<8x32xf32>
    %151 = arith.subf %145, %150 : vector<8x32xf32>
    %152 = arith.mulf %151, %151 : vector<8x32xf32>
    %cst_73 = arith.constant dense<0.000000e+00> : vector<8xf32>
    %153 = vector.multi_reduction <add>, %152, %cst_73 [1] : vector<8x32xf32> to vector<8xf32>
    %154 = vector.shape_cast %153 : vector<8xf32> to vector<8x1xf32>
    %cst_74 = arith.constant 3.200000e+01 : f32
    %155 = vector.broadcast %cst_74 : f32 to vector<8x1xf32>
    %156 = arith.divf %154, %155 : vector<8x1xf32>
    %157 = vector.broadcast %149 : vector<8x1xf32> to vector<8x32xf32>
    %158 = arith.subf %145, %157 : vector<8x32xf32>
    %cst_75 = arith.constant 9.99999974E-6 : f32
    %159 = vector.broadcast %cst_75 : f32 to vector<8x1xf32>
    %160 = arith.addf %156, %159 : vector<8x1xf32>
    %161 = math.rsqrt %160 : vector<8x1xf32>
    %162 = vector.broadcast %161 : vector<8x1xf32> to vector<8x32xf32>
    %163 = arith.mulf %158, %162 : vector<8x32xf32>
    %164 = vector.broadcast %15 : vector<1x32xf32> to vector<8x32xf32>
    %165 = arith.mulf %163, %164 : vector<8x32xf32>
    %166 = vector.broadcast %16 : vector<1x32xf32> to vector<8x32xf32>
    %167 = arith.addf %165, %166 : vector<8x32xf32>
    %c0_76 = arith.constant 0 : index
    %c0_77 = arith.constant 0 : index
    %168 = vector.load %arg10[%c0_76, %c0_77] : memref<8x32xf32, #tpu.memory_space<vmem>>, vector<8x32xf32>
    tpu.vector_store %arg10[%c0_76, %c0_77], %167 {strides = array<i32>} : memref<8x32xf32, #tpu.memory_space<vmem>>, vector<8x32xf32>,
    %c1_i32 = arith.constant 1 : i32
    %169 = arith.cmpi eq, %arg1, %c1_i32 : i32
    %170 = arith.extui %169 : i1 to i32
    %c0_i32_78 = arith.constant 0 : i32
    %171 = arith.cmpi ne, %170, %c0_i32_78 : i32
    scf.if %171 {
      %172 = vector.broadcast %1 : vector<8x1xf32> to vector<8x32xf32>
      %173 = arith.mulf %167, %172 : vector<8x32xf32>
      %c0_79 = arith.constant 0 : index
      %c0_80 = arith.constant 0 : index
      %c0_81 = arith.constant 0 : index
      %174 = vector.load %arg9[%c0_79, %c0_80, %c0_81] : memref<1x8x32xf32, #tpu.memory_space<vmem>>, vector<1x8x32xf32>
      %175 = vector.shape_cast %174 : vector<1x8x32xf32> to vector<8x32xf32>
      %176 = vector.shape_cast %173 : vector<8x32xf32> to vector<1x8x32xf32>
      tpu.vector_store %arg9[%c0_79, %c0_80, %c0_81], %176 {strides = array<i32>} : memref<1x8x32xf32, #tpu.memory_space<vmem>>, vector<1x8x32xf32>,
    } else {
    }
    return
  }
  func.func @transform_0(%arg0: i32, %arg1: i32) -> (i32, i32, i32) {
    %c0_i32 = arith.constant 0 : i32
    %c0_i32_0 = arith.constant 0 : i32
    %c0_i32_1 = arith.constant 0 : i32
    return %arg0, %c0_i32, %c0_i32_0 : i32, i32, i32
  }
  func.func @transform_1(%arg0: i32, %arg1: i32) -> (i32, i32, i32) {
    %c0_i32 = arith.constant 0 : i32
    %c0_i32_0 = arith.constant 0 : i32
    %c0_i32_1 = arith.constant 0 : i32
    return %arg0, %c0_i32, %c0_i32_0 : i32, i32, i32
  }
  func.func @transform_2(%arg0: i32, %arg1: i32) -> (i32, i32, i32, i32) {
    %c0_i32 = arith.constant 0 : i32
    %c0_i32_0 = arith.constant 0 : i32
    %c0_i32_1 = arith.constant 0 : i32
    %c0_i32_2 = arith.constant 0 : i32
    return %arg1, %c0_i32, %c0_i32_0, %c0_i32_1 : i32, i32, i32, i32
  }
  func.func @transform_3(%arg0: i32, %arg1: i32) -> (i32, i32, i32) {
    %c0_i32 = arith.constant 0 : i32
    %c0_i32_0 = arith.constant 0 : i32
    %c0_i32_1 = arith.constant 0 : i32
    return %arg1, %c0_i32, %c0_i32_0 : i32, i32, i32
  }
  func.func @transform_4(%arg0: i32, %arg1: i32) -> (i32, i32, i32, i32) {
    %c0_i32 = arith.constant 0 : i32
    %c0_i32_0 = arith.constant 0 : i32
    %c0_i32_1 = arith.constant 0 : i32
    %c0_i32_2 = arith.constant 0 : i32
    return %arg1, %c0_i32, %c0_i32_0, %c0_i32_1 : i32, i32, i32, i32
  }
  func.func @transform_5(%arg0: i32, %arg1: i32) -> (i32, i32, i32, i32) {
    %c0_i32 = arith.constant 0 : i32
    %c0_i32_0 = arith.constant 0 : i32
    %c0_i32_1 = arith.constant 0 : i32
    %c0_i32_2 = arith.constant 0 : i32
    return %arg1, %c0_i32, %c0_i32_0, %c0_i32_1 : i32, i32, i32, i32
  }
  func.func @transform_6(%arg0: i32, %arg1: i32) -> (i32, i32, i32) {
    %c0_i32 = arith.constant 0 : i32
    %c0_i32_0 = arith.constant 0 : i32
    %c0_i32_1 = arith.constant 0 : i32
    return %arg1, %c0_i32, %c0_i32_0 : i32, i32, i32
  }
  func.func @transform_7(%arg0: i32, %arg1: i32) -> (i32, i32, i32) {
    %c0_i32 = arith.constant 0 : i32
    %c0_i32_0 = arith.constant 0 : i32
    %c0_i32_1 = arith.constant 0 : i32
    return %arg0, %c0_i32, %c0_i32_0 : i32, i32, i32
  }
}

</mosaic_0001>

<bundles_post_ra>
// kernel: tpu_custom_call.1
= control target key start
LH: loop header
LB: loop body
LE: loop exit
PB: predicated region body
PF: predicated region fallthrough
CT: control target
= control target key end

     0   :  { %s2691_s0 = inlined_call_operand.vmem [shape: f32[2,8,32], index: 0, kind: input, shape index: {}]   ;;  %s2692_s1 = inlined_call_operand.vmem [shape: f32[2,8,1], index: 1, kind: input, shape index: {}]   ;;  %s2693_s2 = inlined_call_operand.vmem [shape: bf16[2,3,32,32], index: 2, kind: input, shape index: {}]   ;;  %s2694_s3 = inlined_call_operand.vmem [shape: bf16[2,32,32], index: 3, kind: input, shape index: {}]   ;;  %s2695_s4 = inlined_call_operand.vmem [shape: bf16[2,3,32,64], index: 4, kind: input, shape index: {}]   ;;  %s2696_s5 = inlined_call_operand.vmem [shape: bf16[2,3,64,32], index: 5, kind: input, shape index: {}]   ;;  %s2697_s6 = inlined_call_operand.vmem [shape: f32[2,10,64], index: 6, kind: input, shape index: {}]   ;;  %s2698_s7 = inlined_call_operand.hbm [shape: f32[2,8,32], index: 7, kind: output, shape index: {}]  }
   0x1   :  { %2706 = sst [smem:[#allocation15_spill]] %s2691_s0 }
   0x2   :  { %12 = vsyncpa [#allocation5], 0 }
   0x3   :  { %14 = vsyncpa [#allocation5 + $0x1], 0  ;;  %s2234_s24 = smov 0   ;;  %s2236_s25 = smov 0  }
   0x4   :  { %s2238_s26 = smov 0   ;;  %s2240_s27 = smov 0  }
   0x5   :  { %s2242_s28 = smov 0   ;;  %s2244_s29 = smov 0  }
   0x6   :  { %s2246_s30 = smov 0   ;;  %s2248_s8 = smov 0  }
   0x7 LB: > { %2707 = sst [smem:[#allocation7_spill]] %s2152_s24  ;;  %s1772_s9 = sadd.s32 4294967295, %s2180_s8   ;;  %s2180_s8 = sphi %s2248_s8, %s20_s8   ;;  %s2176_s30 = sphi %s2246_s30, %s2726_s30   ;;  %s2172_s29 = sphi %s2244_s29, %s2725_s29   ;;  %s2168_s28 = sphi %s2242_s28, %s2724_s28   ;;  %s2164_s27 = sphi %s2240_s27, %s2723_s27   ;;  %s2160_s26 = sphi %s2238_s26, %s2722_s26   ;;  %s2156_s25 = sphi %s2236_s25, %s2728_s25   ;;  %s2152_s24 = sphi %s2234_s24, %s2727_s24  }
   0x8   : > { %2708 = sst [smem:[#allocation8_spill]] %s2160_s26  ;;  %s1773_s10 = sadd.s32 4294967294, %s2180_s8  }
   0x9   : > { %2709 = sst [smem:[#allocation9_spill]] %s2172_s29  ;;  %s29_s11 = sadd.s32 1, %s2172_s29 }
   0xa   : > { %2710 = sst [smem:[#allocation10_spill]] %s2176_s30  ;;  %p30_p0 = scmp.ge.s32.totalorder %s29_s11, 2 }
   0xb   : > { %s32_s12 = sadd.s32 1, %s2176_s30  ;;  %p231_p1 = scmp.ne.s32.totalorder %s2160_s26, %s2156_s25 }
   0xc   : > { %p232_p2 = scmp.eq.s32.totalorder %s1772_s9, 3  ;;  %s2730_s11 = smov (%p30_p0, %s29_s11), 0 }
   0xd   : > { %2711 = sst [smem:[#allocation11_spill]] %s2730_s11  ;;  %s2732_s12 = smov (!%p30_p0, %s32_s12), %s2176_s30 }
   0xe   : > { %p2283_p3 = por %p232_p2, %p231_p1  ;;  %p237_p4 = scmp.ne.s32.totalorder %s2156_s25, %s2152_s24 }
   0xf   : > { %p34_p5 = scmp.ge.s32.totalorder %s2732_s12, 2  ;;  %p238_p6 = scmp.eq.s32.totalorder %s1773_s10, 3 }
  0x10   : > { %p1776_p7 = scmp.ge.s32.totalorder %s2180_s8, 1  ;;  %p310_p8 = scmp.lt.s32.totalorder %s2180_s8, 5 }
  0x11   : > { %s2734_s12 = smov (%p34_p5, %s2732_s12), 0  ;;  %p2293_p9 = por %p238_p6, %p237_p4 }
  0x12   : > { %2713 = sst [smem:[#allocation12_spill]] %s2734_s12  ;;  %p311_p10 = pnand %p1776_p7, %p310_p8 }
  0x13   : > { %s2714_s14 = scalar_select %p2293_p9, 1, 0 }
  0x14   : > { %s218_s15 = ssub.s32 %s2176_s30, %s2734_s12  ;;  %s221_s16 = sadd.s32 1, %s2160_s26 }
  0x15   : > { %2715 = sst [smem:[#allocation13_spill]] %s2714_s14  ;;  %p219_p11 = scmp.eq.s32.totalorder %s218_s15, 0 }
  0x16   : > { %314 = sbr.rel (%p311_p10) target bundleno = 2103 (0x837), region = 48  ;;  %s2702_s18 = sand.u32 (!%p311_p10), 1, %s2156_s25  }
  0x17   : > { %s2301_s17 = scalar_select %p219_p11, %s2160_s26, %s221_s16  }
  0x18   : > { %p370_p12 = scmp.lt.s32.totalorder (!%p311_p10), %s2168_s28, 1  ;;  %s2307_s19 = sshll.u32 (!%p311_p10), %s2702_s18, 3 }
  0x19   : > { %2716 = sst [smem:[#allocation14_spill]] %s2301_s17  ;;  %p378_p13 = scmp.lt.s32.totalorder (!%p311_p10), %s2164_s27, 1 }
  0x1a   : > { %s2717_s0 = sld [smem:[#allocation15_spill]] (!%p311_p10)  ;;  %p1787_p0 = scmp.ne.s32.totalorder (!%p311_p10), %s2164_s27, 0 }
  0x1b   : > { %s371_s20 = scalar_select %p370_p12, %s2168_s28, 1 }
  0x1c   : > { %s379_s21 = scalar_select %p378_p13, %s2164_s27, 1 }
  0x1d   : > { %s1778_s22 = sshll.u32 %s371_s20, 3 }
  0x1e   : > { %s377_s12 = scalar_lea.vmem %s2692_s1, %s1778_s22  ;;  %s1975_s11 = smul.u32 48, %s379_s21 }
  0x1f   : > { %s1947_s30 = sshll.u32 %s379_s21, 4  ;;  %v2318_v0 = vld [vmem:[%s377_s12] sm:$0xff]  ;;  %s1976_s26 = smul.u32 96, %s379_s21 }
  0x20   : > { %s373_s10 = scalar_lea.vmem %s2717_s0, %s1778_s22  ;;  %s2323_s17 = scalar_lea.vmem %s2694_s3, %s1947_s30 }
  0x21   : > { %s2328_s24 = scalar_lea.vmem %s2693_s2, %s1975_s11  ;;  %s2333_s15 = scalar_lea.vmem %s2695_s4, %s1975_s11 }
  0x22   : > { %s2338_s12 = scalar_lea.vmem %s2696_s5, %s1976_s26  ;;  %s2343_s18 = scalar_lea.vmem %s2697_s6, %s1947_s30 }
  0x23   : > { %s369_s21 = scalar_lea.vmem [#allocation4], %s2307_s19  ;;  %408 = sbr.rel (%p1787_p0) target bundleno = 160 (0xa0), region = 52 }
  0x28   : > { %v2182_v1 = vmov 0   ;;  %v418_v2 = vlaneseq  ;;  %v2183_v5 = vmov -10000.0   ;;  %vm424_vm1 = vcmask 64512   ;;  %v409_v7 = vld [vmem:[%s373_s10] sm:$0xff] }
  0x29   : > { %2060 = vset.pattern.permute.xlu0 %v2182_v1  ;;  %vm416_vm2 = vcmask 261120  }
  0x2a   : > { %412 = vperm.xlu0 %2060, %v2318_v0   ;;  %v419_v3 = vshrl.u32 %v418_v2, 7  ;;  %v421_v4 = vand.u32 127, %v418_v2 }
  0x2c   : > { %vm422_vm0 = vcmp.le.s32.totalorder %v421_v4, %v419_v3 }
  0x2d   : > { %v423_v6 = vsel %vm422_vm0, 0.0, %v2183_v5 }
  0x2e   : > { %425 = vst.msk [vmem:[#allocation3] sm:$0xff] %vm424_vm1, %v423_v6 }
  0x9c   : > { %v413_v8 = vpop.permute.xlu0 %412 }
  0x9d   : > { %v415_v9 = vmul.f32 %v413_v8, %v409_v7 }
  0x9f   : > { %417 = vst.msk [vmem:[#allocation2] sm:$0xff] %vm416_vm2, %v415_v9 }
  0xa0 PF: > { %v1950_v10 = vld [vmem:[%s2328_s24 + $0x8] sm:$0xff]  ;;  %v1952_v11 = vld [vmem:[%s2328_s24 + $0x18] sm:$0xff]  ;;  %v1949_v12 = vld [vmem:[%s2328_s24] sm:$0xff]  ;;  %vm447_vm3 = vcmask 261120   ;;  %s2184_s0 = smov 104   ;;  %s2185_s26 = smov 120  }
  0xa1   : > { %457 = vmatpush.bf16.msra.mxu0 %v1950_v10  ;;  %488 = vmatpush.bf16.msra.mxu1 %v1952_v11  ;;  %v1951_v13 = vld [vmem:[%s2328_s24 + $0x10] sm:$0xff]  ;;  %v2359_v16 = vld [vmem:[%s2343_s18] sm:$0xff]  ;;  %s2186_s30 = smov 112   ;;  %v1954_v26 = vld [vmem:[%s2328_s24 + $0x28] sm:$0xff]  ;;  %v2187_v29 = vmov 1983009808  }
  0xa2   : > { %v434_v17 = vperm.slane %v2359_v16, 0  ;;  %v469_v18 = vperm.slane %v2359_v16, 1  ;;  %519 = vmatpush.bf16.msra.mxu2 %v1954_v26  ;;  %v1953_v27 = vld [vmem:[%s2328_s24 + $0x20] sm:$0xff]  ;;  %v543_v30 = vunpack.c.l.s4 %v2187_v29  ;;  %vm538_vm4 = vcmask 1047556   ;;  %s2189_s24 = smov 24   ;;  %s2190_s11 = smov 16  }
  0xa3   : > { %v2188_v42 = vmov 1934713408   ;;  %vm897_vm5 = vcmask 64512   ;;  %vm1029_vm6 = vcmask 1043456   ;;  %s2191_s14 = smov 8   ;;  %vm1226_vm7 = vcmask 130048  }
  0xa4   : > { %v2373_v38 = vunpack.c.0.s8 %v543_v30  ;;  %v567_v43 = vunpack.c.l.s4 %v2188_v42  ;;  %vm1228_vm8 = vcmask 195584   ;;  %vm1342_vm13 = vcmask 1041408   ;;  %p1942_p1 = scmp.ne.s32.totalorder %s2164_s27, 1 }
  0xa5   : > { %458 = vmatpush.bf16.msra.mxu0 %v1949_v12  ;;  %489 = vmatpush.bf16.msra.mxu1 %v1951_v13  ;;  %vm1380_vm14 = vcmask 1040384   ;;  %vm1454_vm15 = vcmask 523264  }
  0xa6   : > { %v2352_v14 = vld [vmem:[#allocation2] sm:$0xff]  ;;  %520 = vmatpush.bf16.msra.mxu2 %v1953_v27  ;;  %v2382_v51 = vunpack.c.0.s8 %v567_v43 }
  0xa7   : > { %v429_v15 = vpack.c.bf16 %v2352_v14, %v2352_v14 }
  0xa9   : > { %1796 = vmatmul.msk.bf16.vlgmr.msra.gmra.mxu0 %vm447_vm3, %v429_v15  ;;  %1809 = vmatmul.msk.bf16.vlgmr.msra.gmra.mxu1 %vm447_vm3, %v429_v15 }
  0xaa   : > { %1822 = vmatmul.msk.bf16.vlgmr.msra.gmra.mxu2 %vm447_vm3, %v429_v15 }
 0x126   : > { %v460_v19 = vpop.f32.mrf.mxu0  ;;  %v491_v20 = vpop.f32.mrf.mxu1 }
 0x127   : > { %v461_v21 = vadd.f32 %v460_v19, %v434_v17  ;;  %v492_v22 = vadd.f32 %v491_v20, %v469_v18 }
 0x129   : > { %v526_v23 = vmul.f32 0.35355338, %v461_v21  ;;  %655 = vrot.lane.b32.xlu1 %v492_v22, %s2184_s0  ;;  %649 = vrot.lane.b32.xlu0 %v492_v22, %s2185_s26  ;;  %v660_v49 = vrot.slane %v492_v22, 4 }
 0x12b   : > { %531 = vrot.lane.b32.xlu2 %v526_v23, %s2186_s30  ;;  %v540_v36 = vrot.slane %v526_v23, 4 }
 0x12e   : > { %v493_v24 = vpop.f32.mrf.mxu1  ;;  %v462_v25 = vpop.f32.mrf.mxu0 }
 0x131   : > { %652 = vrot.lane.b32.xlu0 %v492_v22, %s2186_s30  ;;  %528 = vrot.lane.b32.xlu1 %v526_v23, %s2185_s26 }
 0x133   : > { %534 = vrot.lane.b32.xlu2 %v526_v23, %s2184_s0 }
 0x185   : > { %v532_v28 = vpop.permute.xlu2 %531 }
 0x186   : > { %v537_v31 = vrot.slane %v532_v28, 4  ;;  %v541_v44 = vsel %vm538_vm4, %v532_v28, %v540_v36 }
 0x187   : > { %v549_v50 = vperm.slane %v541_v44, %v2373_v38 }
 0x188   : > { %v539_v39 = vsel %vm538_vm4, %v537_v31, %v526_v23 }
 0x189   : > { %v545_v46 = vperm.slane %v539_v39, %v2373_v38  ;;  %v576_v6 = vrot.slane %v549_v50, 4 }
 0x18b   : > { %v564_v61 = vrot.slane %v545_v46, 4 }
 0x18d   : > { %v535_v41 = vpop.permute.xlu2 %534 }
 0x18e   : > { %v550_v48 = vrot.slane %v535_v41, 4 }
 0x19b   : > { %v656_v32 = vpop.permute.xlu1 %655  ;;  %v650_v33 = vpop.permute.xlu0 %649 }
 0x19c   : > { %v670_v34 = vrot.slane %v656_v32, 4  ;;  %v672_v35 = vrot.slane %v650_v33, 4 }
 0x19e   : > { %v673_v37 = vsel %vm538_vm4, %v656_v32, %v672_v35  ;;  %v671_v40 = vsel %vm538_vm4, %v670_v34, %v650_v33 }
 0x19f   : > { %v681_v45 = vperm.slane %v673_v37, %v2373_v38  ;;  %v677_v47 = vperm.slane %v671_v40, %v2373_v38 }
 0x1a1   : > { %v694_v58 = vrot.slane %v681_v45, 4  ;;  %v682_v62 = vrot.slane %v677_v47, 4 }
 0x1a3   : > { %v653_v52 = vpop.permute.xlu0 %652  ;;  %v529_v53 = vpop.permute.xlu1 %528 }
 0x1a4   : > { %v658_v54 = vrot.slane %v653_v52, 4  ;;  %v661_v55 = vsel %vm538_vm4, %v653_v52, %v660_v49  ;;  %v551_v56 = vsel %vm538_vm4, %v550_v48, %v529_v53  ;;  %v552_v57 = vrot.slane %v529_v53, 4 }
 0x1a5   : > { %v669_v59 = vperm.slane %v661_v55, %v2373_v38  ;;  %v557_v60 = vperm.slane %v551_v56, %v2373_v38 }
 0x1a6   : > { %v659_v63 = vsel %vm538_vm4, %v658_v54, %v492_v22  ;;  %v553_v1 = vsel %vm538_vm4, %v535_v41, %v552_v57 }
 0x1a7   : > { %v665_v2 = vperm.slane %v659_v63, %v2373_v38  ;;  %v695_v3 = vsel %vm538_vm4, %v694_v58, %v669_v59  ;;  %v696_v4 = vrot.slane %v669_v59, 4  ;;  %v561_v5 = vperm.slane %v553_v1, %v2373_v38 }
 0x1a8   : > { %v701_v7 = vperm.slane %v695_v3, %v2382_v51  ;;  %v562_v8 = vrot.slane %v557_v60, 4  ;;  %v565_v9 = vsel %vm538_vm4, %v557_v60, %v564_v61 }
 0x1a9   : > { %v683_v10 = vsel %vm538_vm4, %v682_v62, %v665_v2  ;;  %v684_v11 = vrot.slane %v665_v2, 4  ;;  %v697_v12 = vsel %vm538_vm4, %v681_v45, %v696_v4  ;;  %v573_v13 = vperm.slane %v565_v9, %v2382_v51 }
 0x1aa   : > { %v689_v15 = vperm.slane %v683_v10, %v2382_v51  ;;  %v705_v17 = vperm.slane %v697_v12, %v2382_v51  ;;  %v710_v18 = vrot.slane %v701_v7, 4  ;;  %v563_v19 = vsel %vm538_vm4, %v562_v8, %v545_v46 }
 0x1ab   : > { %v685_v20 = vsel %vm538_vm4, %v677_v47, %v684_v11  ;;  %v569_v21 = vperm.slane %v563_v19, %v2382_v51  ;;  %v574_v22 = vrot.slane %v561_v5, 4  ;;  %v577_v23 = vsel %vm538_vm4, %v561_v5, %v576_v6 }
 0x1ac   : > { %v693_v24 = vperm.slane %v685_v20, %v2382_v51  ;;  %v706_v25 = vrot.slane %v689_v15, 4  ;;  %v711_v26 = vsel %vm538_vm4, 0.0, %v710_v18  ;;  %v712_v27 = vrot.slane %v705_v17, 4 }
 0x1ad   : > { %v575_v28 = vsel %vm538_vm4, %v574_v22, %v549_v50  ;;  %v585_v29 = vperm.slane %v577_v23, %v2382_v51  ;;  %v586_v30 = vrot.slane %v569_v21, 4  ;;  %v588_v31 = vrot.slane %v573_v13, 4 }
 0x1ae   : > { %v708_v32 = vrot.slane %v693_v24, 4  ;;  %v713_v33 = vsel %vm538_vm4, 0.0, %v712_v27  ;;  %v725_v34 = vsel %vm538_vm4, %v712_v27, %v701_v7  ;;  %v581_v35 = vperm.slane %v575_v28, %v2382_v51 }
 0x1af   : > { %v729_v36 = vperm.slane %v725_v34, %v2373_v38  ;;  %v730_v37 = vrot.slane %v713_v33, 4  ;;  %v587_v39 = vsel %vm538_vm4, 0.0, %v586_v30  ;;  %v589_v40 = vsel %vm538_vm4, 0.0, %v588_v31 }
 0x1b0   : > { %v709_v41 = vsel %vm538_vm4, 0.0, %v708_v32  ;;  %v590_v42 = vrot.slane %v581_v35, 4  ;;  %v592_v43 = vrot.slane %v585_v29, 4  ;;  %v594_v44 = vsel %vm538_vm4, %v588_v31, %v569_v21 }
 0x1b1   : > { %v719_v45 = vrot.slane %v709_v41, 4  ;;  %v731_v46 = vsel %vm538_vm4, %v730_v37, %v711_v26  ;;  %v598_v47 = vperm.slane %v594_v44, %v2373_v38  ;;  %v599_v48 = vrot.slane %v589_v40, 4 }
 0x1b2   : > { %v591_v49 = vsel %vm538_vm4, 0.0, %v590_v42  ;;  %v593_v50 = vsel %vm538_vm4, 0.0, %v592_v43  ;;  %v605_v52 = vsel %vm538_vm4, %v592_v43, %v581_v35  ;;  %v707_v53 = vsel %vm538_vm4, 0.0, %v706_v25 }
 0x1b3   : > { %v600_v54 = vsel %vm538_vm4, %v599_v48, %v587_v39  ;;  %v609_v55 = vperm.slane %v605_v52, %v2373_v38  ;;  %v610_v56 = vrot.slane %v593_v50, 4  ;;  %v618_v57 = vrot.slane %v598_v47, 4 }
 0x1b4   : > { %v604_v58 = vperm.slane %v600_v54, %v2373_v38  ;;  %v714_v59 = vsel %vm538_vm4, %v708_v32, %v689_v15  ;;  %v720_v60 = vsel %vm538_vm4, %v719_v45, %v707_v53  ;;  %v735_v61 = vperm.slane %v731_v46, %v2373_v38 }
 0x1b5   : > { %v611_v62 = vsel %vm538_vm4, %v610_v56, %v591_v49  ;;  %v718_v63 = vperm.slane %v714_v59, %v2373_v38  ;;  %v724_v1 = vperm.slane %v720_v60, %v2373_v38  ;;  %v750_v2 = vrot.slane %v729_v36, 4  ;;  %v896_v60 = vld [vmem:[#allocation3] sm:$0xff] }
 0x1b6   : > { %v748_v3 = vrot.slane %v735_v61, 4  ;;  %v615_v4 = vperm.slane %v611_v62, %v2373_v38  ;;  %v630_v5 = vrot.slane %v609_v55, 4  ;;  %v619_v9 = vsel %vm538_vm4, %v604_v58, %v618_v57 }
 0x1b7   : > { %v738_v6 = vrot.slane %v718_v63, 4  ;;  %v751_v7 = vsel %vm538_vm4, %v735_v61, %v750_v2  ;;  %v736_v8 = vrot.slane %v724_v1, 4  ;;  %v616_v13 = vrot.slane %v604_v58, 4  ;;  %v522_v58 = vpop.f32.mrf.mxu2 }
 0x1b8   : > { %v759_v10 = vperm.slane %v751_v7, %v2382_v51  ;;  %v749_v11 = vsel %vm538_vm4, %v748_v3, %v729_v36  ;;  %v631_v12 = vsel %vm538_vm4, %v615_v4, %v630_v5  ;;  %v627_v25 = vperm.slane %v619_v9, %v2382_v51 }
 0x1b9   : > { %v739_v15 = vsel %vm538_vm4, %v724_v1, %v738_v6  ;;  %v737_v17 = vsel %vm538_vm4, %v736_v8, %v718_v63  ;;  %v755_v18 = vperm.slane %v749_v11, %v2382_v51  ;;  %v639_v19 = vperm.slane %v631_v12, %v2382_v51 }
 0x1ba   : > { %v747_v20 = vperm.slane %v739_v15, %v2382_v51  ;;  %v764_v21 = vrot.slane %v759_v10, 4  ;;  %v743_v22 = vperm.slane %v737_v17, %v2382_v51  ;;  %v617_v23 = vsel %vm538_vm4, %v616_v13, %v598_v47 }
 0x1bb   : > { %v760_v24 = vrot.slane %v755_v18, 4  ;;  %v628_v26 = vrot.slane %v615_v4, 4  ;;  %v623_v30 = vperm.slane %v617_v23, %v2382_v51  ;;  %v644_v37 = vrot.slane %v639_v19, 4 }
 0x1bc   : > { %v765_v27 = vsel %vm538_vm4, %v764_v21, %v747_v20  ;;  %v766_v28 = vrot.slane %v747_v20, 4  ;;  %v762_v29 = vrot.slane %v743_v22, 4  ;;  %v646_v45 = vrot.slane %v627_v25, 4 }
 0x1bd   : > { %v894_v31 = vpack.c.bf16 %v765_v27, %v765_v27  ;;  %v761_v32 = vsel %vm538_vm4, %v760_v24, %v743_v22  ;;  %v629_v33 = vsel %vm538_vm4, %v628_v26, %v609_v55  ;;  %v642_v44 = vrot.slane %v623_v30, 4 }
 0x1be   : > { %v892_v34 = vpack.c.bf16 %v761_v32, %v761_v32  ;;  %v767_v35 = vsel %vm538_vm4, %v759_v10, %v766_v28  ;;  %v763_v36 = vsel %vm538_vm4, %v755_v18, %v762_v29  ;;  %v635_v42 = vperm.slane %v629_v33, %v2382_v51 }
 0x1bf   : > { %v940_v39 = vsel %vm897_vm5, %v894_v31, 0  ;;  %v895_v40 = vpack.c.bf16 %v767_v35, %v767_v35  ;;  %v893_v41 = vpack.c.bf16 %v763_v36, %v763_v36  ;;  %v645_v49 = vsel %vm538_vm4, %v644_v37, %v627_v25  ;;  %v524_v59 = vpop.f32.mrf.mxu2 }
 0x1c0   : > { %949 = vmatpush.bf16.xpose.msrb.mxu1 %v940_v39  ;;  %v902_v43 = vsel %vm897_vm5, %v892_v34, 0  ;;  %v640_v48 = vrot.slane %v635_v42, 4  ;;  %v647_v52 = vsel %vm538_vm4, %v639_v19, %v646_v45  ;;  %v643_v53 = vsel %vm538_vm4, %v635_v42, %v642_v44 }
 0x1c1   : > { %911 = vmatpush.bf16.xpose.msra.mxu3 %v902_v43  ;;  %v959_v46 = vsel %vm897_vm5, %v895_v40, 0  ;;  %v921_v47 = vsel %vm897_vm5, %v893_v41, 0  ;;  %v890_v54 = vpack.c.bf16 %v645_v49, %v645_v49  ;;  %v891_v56 = vpack.c.bf16 %v647_v52, %v647_v52 }
 0x1c2   : > { %968 = vmatpush.bf16.xpose.msrb.mxu2 %v959_v46  ;;  %930 = vmatpush.bf16.xpose.msrb.mxu0 %v921_v47  ;;  %v641_v50 = vsel %vm538_vm4, %v640_v48, %v623_v30  ;;  %v889_v57 = vpack.c.bf16 %v643_v53, %v643_v53  ;;  %v500_v15 = vperm.slane %v2359_v16, 2 }
 0x1c3   : > { %v888_v55 = vpack.c.bf16 %v641_v50, %v641_v50 }
 0x1c4   : > { %v523_v17 = vadd.f32 %v522_v58, %v500_v15 }
 0x1c6   : > { %v780_v46 = vrot.slane %v523_v17, 4 }
 0x1c7   : > { %1825 = vmatmul.msk.bf16.vlgmr.msrb.gmra.mxu1 %vm897_vm5, %v890_v54 }
 0x1c8   : > { %1823 = vmatmul.msk.bf16.vlgmr.msra.gmra.mxu3 %vm897_vm5, %v888_v55 }
 0x1c9   : > { %1826 = vmatmul.msk.bf16.vlgmr.msrb.gmra.mxu2 %vm897_vm5, %v891_v56  ;;  %1824 = vmatmul.msk.bf16.vlgmr.msrb.gmra.mxu0 %vm897_vm5, %v889_v57 }
 0x244   : > { %v951_v61 = vpop.f32.mrf.mxu1 }
 0x245   : > { %v952_v62 = vadd.f32 %v951_v61, %v896_v60 }
 0x246   : > { %v932_v63 = vpop.f32.mrf.mxu0 }
 0x247   : > { %v980_v1 = vsel %vm897_vm5, %v952_v62, -inf  ;;  %v933_v2 = vadd.f32 %v932_v63, %v896_v60 }
 0x248   : > { %981 = vmax.xlane.f32.xlu2 %v980_v1 }
 0x249   : > { %v977_v11 = vsel %vm897_vm5, %v933_v2, -inf }
 0x24b   : > { %v913_v3 = vpop.f32.mrf.mxu3 }
 0x24c   : > { %v914_v4 = vadd.f32 %v913_v3, %v896_v60  ;;  %v953_v5 = vpop.f32.mrf.mxu1  ;;  %v970_v6 = vpop.f32.mrf.mxu2 }
 0x24d   : > { %v971_v7 = vadd.f32 %v970_v6, %v896_v60 }
 0x24e   : > { %v934_v8 = vpop.f32.mrf.mxu0  ;;  %v974_v9 = vsel %vm897_vm5, %v914_v4, -inf }
 0x24f   : > { %v983_v10 = vsel %vm897_vm5, %v971_v7, -inf  ;;  %975 = vmax.xlane.f32.xlu0 %v974_v9 }
 0x250   : > { %984 = vmax.xlane.f32.xlu1 %v983_v10  ;;  %978 = vmax.xlane.f32.xlu2 %v977_v11 }
 0x253   : > { %v915_v12 = vpop.f32.mrf.mxu3 }
 0x254   : > { %v972_v13 = vpop.f32.mrf.mxu2 }
 0x263   : > { %769 = vrot.lane.b32.xlu0 %v523_v17, %s2185_s26 }
 0x268   : > { %775 = vrot.lane.b32.xlu2 %v523_v17, %s2184_s0 }
 0x269   : > { %772 = vrot.lane.b32.xlu1 %v523_v17, %s2186_s30 }
 0x2bb   : > { %v982_v18 = vpop.xlane.xlu2 %981 }
 0x2bc   : > { %v988_v19 = vsub.f32 %v952_v62, %v982_v18 }
 0x2be   : > { %v994_v20 = vmul.f32 1.442695, %v988_v19 }
 0x2c0   : > { %2063 = vpow2.f32 %v994_v20 }
 0x2c2   : > { %v976_v21 = vpop.xlane.xlu0 %975 }
 0x2c3   : > { %v985_v22 = vpop.xlane.xlu1 %984  ;;  %v979_v23 = vpop.xlane.xlu2 %978  ;;  %v986_v24 = vsub.f32 %v914_v4, %v976_v21 }
 0x2c4   : > { %v989_v25 = vsub.f32 %v971_v7, %v985_v22  ;;  %v987_v26 = vsub.f32 %v933_v2, %v979_v23 }
 0x2c5   : > { %v990_v27 = vmul.f32 1.442695, %v986_v24 }
 0x2c6   : > { %v2472_v28 = vpop.eup %2063  ;;  %v996_v29 = vmul.f32 1.442695, %v989_v25  ;;  %v992_v31 = vmul.f32 1.442695, %v987_v26 }
 0x2c7   : > { %2065 = vpow2.f32 %v990_v27  ;;  %v1004_v30 = vsel %vm897_vm5, %v2472_v28, 0.0 }
 0x2c8   : > { %2067 = vpow2.f32 %v996_v29  ;;  %1005 = vadd.xlane.f32.xlu2 %v1004_v30 }
 0x2c9   : > { %2069 = vpow2.f32 %v992_v31 }
 0x2cb   : > { %v776_v37 = vpop.permute.xlu2 %775 }
 0x2cc   : > { %v790_v40 = vrot.slane %v776_v37, 4 }
 0x2cd   : > { %v2476_v32 = vpop.eup %2065 }
 0x2ce   : > { %v2478_v33 = vpop.eup %2067  ;;  %v998_v34 = vsel %vm897_vm5, %v2476_v32, 0.0 }
 0x2cf   : > { %v1007_v35 = vsel %vm897_vm5, %v2478_v33, 0.0  ;;  %999 = vadd.xlane.f32.xlu0 %v998_v34  ;;  %v2484_v36 = vpop.eup %2069 }
 0x2d0   : > { %1008 = vadd.xlane.f32.xlu1 %v1007_v35  ;;  %v1001_v42 = vsel %vm897_vm5, %v2484_v36, 0.0 }
 0x2d5   : > { %v770_v39 = vpop.permute.xlu0 %769 }
 0x2d6   : > { %v792_v41 = vrot.slane %v770_v39, 4  ;;  %v791_v43 = vsel %vm538_vm4, %v790_v40, %v770_v39 }
 0x2d7   : > { %1002 = vadd.xlane.f32.xlu0 %v1001_v42  ;;  %v797_v47 = vperm.slane %v791_v43, %v2373_v38 }
 0x2d8   : > { %v793_v44 = vsel %vm538_vm4, %v776_v37, %v792_v41 }
 0x2d9   : > { %v801_v45 = vperm.slane %v793_v44, %v2373_v38  ;;  %v802_v55 = vrot.slane %v797_v47, 4 }
 0x2db   : > { %v814_v48 = vrot.slane %v801_v45, 4  ;;  %v773_v49 = vpop.permute.xlu1 %772 }
 0x2dc   : > { %v778_v50 = vrot.slane %v773_v49, 4  ;;  %v781_v52 = vsel %vm538_vm4, %v773_v49, %v780_v46 }
 0x2dd   : > { %v789_v53 = vperm.slane %v781_v52, %v2373_v38 }
 0x2de   : > { %v779_v54 = vsel %vm538_vm4, %v778_v50, %v523_v17 }
 0x2df   : > { %v785_v56 = vperm.slane %v779_v54, %v2373_v38  ;;  %v815_v57 = vsel %vm538_vm4, %v814_v48, %v789_v53  ;;  %v816_v58 = vrot.slane %v789_v53, 4 }
 0x2e0   : > { %v821_v59 = vperm.slane %v815_v57, %v2382_v51 }
 0x2e1   : > { %v803_v60 = vsel %vm538_vm4, %v802_v55, %v785_v56  ;;  %v804_v61 = vrot.slane %v785_v56, 4  ;;  %v817_v62 = vsel %vm538_vm4, %v801_v45, %v816_v58 }
 0x2e2   : > { %v809_v63 = vperm.slane %v803_v60, %v2382_v51  ;;  %v825_v1 = vperm.slane %v817_v62, %v2382_v51  ;;  %v830_v4 = vrot.slane %v821_v59, 4 }
 0x2e3   : > { %v805_v2 = vsel %vm538_vm4, %v797_v47, %v804_v61 }
 0x2e4   : > { %v813_v3 = vperm.slane %v805_v2, %v2382_v51  ;;  %v832_v5 = vrot.slane %v825_v1, 4  ;;  %v826_v6 = vrot.slane %v809_v63, 4  ;;  %v831_v13 = vsel %vm538_vm4, 0.0, %v830_v4 }
 0x2e6   : > { %v828_v7 = vrot.slane %v813_v3, 4  ;;  %v833_v8 = vsel %vm538_vm4, 0.0, %v832_v5  ;;  %v845_v9 = vsel %vm538_vm4, %v832_v5, %v821_v59  ;;  %v827_v21 = vsel %vm538_vm4, 0.0, %v826_v6 }
 0x2e7   : > { %v849_v10 = vperm.slane %v845_v9, %v2373_v38  ;;  %v850_v11 = vrot.slane %v833_v8, 4 }
 0x2e8   : > { %v829_v12 = vsel %vm538_vm4, 0.0, %v828_v7  ;;  %v834_v15 = vsel %vm538_vm4, %v828_v7, %v809_v63 }
 0x2e9   : > { %v839_v17 = vrot.slane %v829_v12, 4  ;;  %v851_v18 = vsel %vm538_vm4, %v850_v11, %v831_v13  ;;  %v870_v19 = vrot.slane %v849_v10, 4  ;;  %v838_v20 = vperm.slane %v834_v15, %v2373_v38 }
 0x2ea   : > { %v855_v22 = vperm.slane %v851_v18, %v2373_v38 }
 0x2eb   : > { %v840_v23 = vsel %vm538_vm4, %v839_v17, %v827_v21  ;;  %v858_v24 = vrot.slane %v838_v20, 4 }
 0x2ec   : > { %v844_v25 = vperm.slane %v840_v23, %v2373_v38  ;;  %v871_v26 = vsel %vm538_vm4, %v855_v22, %v870_v19  ;;  %v868_v27 = vrot.slane %v855_v22, 4 }
 0x2ed   : > { %v879_v29 = vperm.slane %v871_v26, %v2382_v51 }
 0x2ee   : > { %v859_v30 = vsel %vm538_vm4, %v844_v25, %v858_v24  ;;  %v856_v31 = vrot.slane %v844_v25, 4  ;;  %v869_v34 = vsel %vm538_vm4, %v868_v27, %v849_v10 }
 0x2ef   : > { %v867_v35 = vperm.slane %v859_v30, %v2382_v51  ;;  %v884_v37 = vrot.slane %v879_v29, 4  ;;  %v875_v39 = vperm.slane %v869_v34, %v2382_v51 }
 0x2f0   : > { %v857_v40 = vsel %vm538_vm4, %v856_v31, %v838_v20 }
 0x2f1   : > { %v885_v41 = vsel %vm538_vm4, %v884_v37, %v867_v35  ;;  %v863_v42 = vperm.slane %v857_v40, %v2382_v51  ;;  %v880_v43 = vrot.slane %v875_v39, 4  ;;  %v886_v44 = vrot.slane %v867_v35, 4 }
 0x2f2   : > { %v1024_v45 = vpack.c.bf16 %v885_v41, %v885_v41 }
 0x2f3   : > { %v881_v46 = vsel %vm538_vm4, %v880_v43, %v863_v42  ;;  %v882_v47 = vrot.slane %v863_v42, 4  ;;  %v887_v48 = vsel %vm538_vm4, %v879_v29, %v886_v44 }
 0x2f4   : > { %v1069_v49 = vsel %vm1029_vm6, %v1024_v45, 0  ;;  %v1022_v50 = vpack.c.bf16 %v881_v46, %v881_v46  ;;  %v1025_v52 = vpack.c.bf16 %v887_v48, %v887_v48 }
 0x2f5   : > { %1078 = vmatpush.bf16.msra.mxu1 %v1069_v49  ;;  %v883_v53 = vsel %vm538_vm4, %v875_v39, %v882_v47 }
 0x2f6   : > { %v1031_v54 = vsel %vm1029_vm6, %v1022_v50, 0  ;;  %v1088_v55 = vsel %vm1029_vm6, %v1025_v52, 0  ;;  %v1023_v56 = vpack.c.bf16 %v883_v53, %v883_v53 }
 0x2f7   : > { %1040 = vmatpush.bf16.msrb.mxu3 %v1031_v54  ;;  %1097 = vmatpush.bf16.msra.mxu2 %v1088_v55 }
 0x2f8   : > { %v1050_v57 = vsel %vm1029_vm6, %v1023_v56, 0 }
 0x2f9   : > { %1059 = vmatpush.bf16.msra.mxu0 %v1050_v57 }
 0x33b   : > { %v1006_v58 = vpop.xlane.xlu2 %1005 }
 0x33c   : > { %2071 = vrcp.f32 %v1006_v58 }
 0x342   : > { %v2072_v59 = vpop.eup %2071  ;;  %v1000_v60 = vpop.xlane.xlu0 %999 }
 0x343   : > { %v1016_v61 = vmul.f32 %v2072_v59, %v2472_v28  ;;  %v1009_v62 = vpop.xlane.xlu1 %1008  ;;  %2073 = vrcp.f32 %v1000_v60 }
 0x344   : > { %2075 = vrcp.f32 %v1009_v62 }
 0x345   : > { %v1020_v63 = vpack.c.bf16 %v1016_v61, %v1016_v61 }
 0x347   : > { %1829 = vmatmul.msk.bf16.vlgmr.msra.gmra.mxu1 %vm897_vm5, %v1020_v63 }
 0x349   : > { %v2074_v1 = vpop.eup %2073 }
 0x34a   : > { %v2076_v2 = vpop.eup %2075  ;;  %v1014_v3 = vmul.f32 %v2074_v1, %v2476_v32  ;;  %v1003_v4 = vpop.xlane.xlu0 %1002 }
 0x34b   : > { %v1017_v5 = vmul.f32 %v2076_v2, %v2478_v33  ;;  %2077 = vrcp.f32 %v1003_v4 }
 0x34c   : > { %v1018_v6 = vpack.c.bf16 %v1014_v3, %v1014_v3 }
 0x34d   : > { %v1021_v7 = vpack.c.bf16 %v1017_v5, %v1017_v5 }
 0x34e   : > { %1827 = vmatmul.msk.bf16.vlgmr.msrb.gmra.mxu3 %vm897_vm5, %v1018_v6 }
 0x34f   : > { %1830 = vmatmul.msk.bf16.vlgmr.msra.gmra.mxu2 %vm897_vm5, %v1021_v7 }
 0x351   : > { %v2078_v28 = vpop.eup %2077 }
 0x352   : > { %v1015_v8 = vmul.f32 %v2078_v28, %v2484_v36 }
 0x354   : > { %v1019_v9 = vpack.c.bf16 %v1015_v8, %v1015_v8 }
 0x356   : > { %1828 = vmatmul.msk.bf16.vlgmr.msra.gmra.mxu0 %vm897_vm5, %v1019_v9 }
 0x3c4   : > { %v1080_v10 = vpop.f32.mrf.mxu1 }
 0x3c5   : > { %v1103_v12 = vrot.slane %v1080_v10, 4 }
 0x3cc   : > { %v1082_v11 = vpop.f32.mrf.mxu1 }
 0x3d1   : > { %v1042_v32 = vpop.f32.mrf.mxu3 }
 0x3d2   : > { %v1104_v13 = vsel %vm538_vm4, %v1103_v12, %v1042_v32  ;;  %v1105_v33 = vrot.slane %v1042_v32, 4  ;;  %v1099_v15 = vpop.f32.mrf.mxu2 }
 0x3d3   : > { %v1110_v17 = vperm.slane %v1104_v13, %v2373_v38  ;;  %v1115_v18 = vrot.slane %v1099_v15, 4  ;;  %v1061_v19 = vpop.f32.mrf.mxu0 }
 0x3d4   : > { %v1106_v20 = vsel %vm538_vm4, %v1080_v10, %v1105_v33  ;;  %v1117_v21 = vrot.slane %v1061_v19, 4 }
 0x3d5   : > { %v1114_v36 = vperm.slane %v1106_v20, %v2373_v38  ;;  %v1129_v22 = vrot.slane %v1110_v17, 4  ;;  %v1116_v23 = vsel %vm538_vm4, %v1115_v18, %v1061_v19  ;;  %v1956_v20 = vld [vmem:[%s2323_s17 + $0x8] sm:$0xff] }
 0x3d6   : > { %v1118_v24 = vsel %vm538_vm4, %v1099_v15, %v1117_v21  ;;  %v1122_v25 = vperm.slane %v1116_v23, %v2373_v38  ;;  %1257 = vmatpush.bf16.msra.mxu3 %v1956_v20  ;;  %v1955_v21 = vld [vmem:[%s2323_s17] sm:$0xff]  ;;  %v1964_v20 = vld [vmem:[%s2338_s12 + $0x48] sm:$0xff] }
 0x3d7   : > { %v1141_v26 = vrot.slane %v1114_v36, 4  ;;  %v1126_v27 = vperm.slane %v1118_v24, %v2373_v38 }
 0x3d8   : > { %v1127_v29 = vrot.slane %v1122_v25, 4  ;;  %v1130_v30 = vsel %vm538_vm4, %v1122_v25, %v1129_v22 }
 0x3d9   : > { %v1138_v31 = vperm.slane %v1130_v30, %v2382_v51  ;;  %v1139_v34 = vrot.slane %v1126_v27, 4  ;;  %v1142_v35 = vsel %vm538_vm4, %v1126_v27, %v1141_v26  ;;  %v1044_v37 = vpop.f32.mrf.mxu3  ;;  %v1235_v27 = vperm.slane %v2359_v16, 3 }
 0x3da   : > { %v1128_v39 = vsel %vm538_vm4, %v1127_v29, %v1110_v17  ;;  %v1150_v40 = vperm.slane %v1142_v35, %v2382_v51  ;;  %v1101_v41 = vpop.f32.mrf.mxu2  ;;  %1258 = vmatpush.bf16.msra.mxu3 %v1955_v21  ;;  %v2192_v37 = vmov 32.0   ;;  %v1968_v21 = vld [vmem:[%s2338_s12 + $0x8] sm:$0xff] }
 0x3db   : > { %v1134_v42 = vperm.slane %v1128_v39, %v2382_v51  ;;  %v1140_v43 = vsel %vm538_vm4, %v1139_v34, %v1114_v36  ;;  %v1153_v44 = vrot.slane %v1138_v31, 4  ;;  %v1063_v45 = vpop.f32.mrf.mxu0  ;;  %2079 = vrcp.f32 %v2192_v37 }
 0x3dc   : > { %v1146_v46 = vperm.slane %v1140_v43, %v2382_v51  ;;  %v1157_v47 = vrot.slane %v1150_v40, 4  ;;  %v2193_v39 = vmov 0  }
 0x3dd   : > { %v1151_v48 = vrot.slane %v1134_v42, 4  ;;  %v1154_v49 = vsel %vm538_vm4, 0.0, %v1153_v44  ;;  %v1159_v50 = vsel %vm538_vm4, %v1153_v44, %v1134_v42  ;;  %2061 = vset.pattern.permute.xlu2 %v2193_v39  ;;  %2062 = vset.pattern.permute.xlu0 %v2193_v39 }
 0x3de   : > { %v1155_v52 = vrot.slane %v1146_v46, 4  ;;  %v1158_v53 = vsel %vm538_vm4, 0.0, %v1157_v47  ;;  %v1163_v54 = vperm.slane %v1159_v50, %v2373_v38  ;;  %v1164_v55 = vrot.slane %v1154_v49, 4  ;;  %v1958_v49 = vld [vmem:[%s2333_s15 + $0x28] sm:$0xff] }
 0x3df   : > { %v1152_v56 = vsel %vm538_vm4, 0.0, %v1151_v48  ;;  %v1175_v57 = vrot.slane %v1158_v53, 4  ;;  %v1170_v58 = vsel %vm538_vm4, %v1157_v47, %v1146_v46  ;;  %1332 = vmatpush.bf16.msrb.mxu0 %v1958_v49  ;;  %v1960_v53 = vld [vmem:[%s2333_s15 + $0x8] sm:$0xff] }
 0x3e0   : > { %v1156_v59 = vsel %vm538_vm4, 0.0, %v1155_v52  ;;  %v1165_v60 = vsel %vm538_vm4, %v1164_v55, %v1152_v56  ;;  %v1174_v61 = vperm.slane %v1170_v58, %v2373_v38  ;;  %v1183_v62 = vrot.slane %v1163_v54, 4  ;;  %v1957_v55 = vld [vmem:[%s2333_s15 + $0x20] sm:$0xff]  ;;  %1370 = vmatpush.bf16.msrb.mxu1 %v1960_v53  ;;  %v1961_v58 = vld [vmem:[%s2333_s15 + $0x10] sm:$0xff] }
 0x3e1   : > { %v1169_v63 = vperm.slane %v1165_v60, %v2373_v38  ;;  %v1176_v1 = vsel %vm538_vm4, %v1175_v57, %v1156_v59  ;;  %v2080_v40 = vpop.eup %2079  ;;  %v1959_v57 = vld [vmem:[%s2333_s15] sm:$0xff] }
 0x3e2   : > { %v1180_v2 = vperm.slane %v1176_v1, %v2373_v38  ;;  %v1195_v3 = vrot.slane %v1174_v61, 4  ;;  %v1269_v41 = vmul.f32 32.0, %v2080_v40  ;;  %vm1273_vm9 = vweird.f32 %v2080_v40 }
 0x3e3   : > { %v1184_v4 = vsel %vm538_vm4, %v1169_v63, %v1183_v62  ;;  %v1181_v5 = vrot.slane %v1169_v63, 4  ;;  %1333 = vmatpush.bf16.msrb.mxu0 %v1957_v55 }
 0x3e4   : > { %v1192_v6 = vperm.slane %v1184_v4, %v2382_v51  ;;  %v1196_v7 = vsel %vm538_vm4, %v1180_v2, %v1195_v3  ;;  %v1193_v28 = vrot.slane %v1180_v2, 4  ;;  %v1270_v42 = vsub.f32 1.0, %v1269_v41  ;;  %1371 = vmatpush.bf16.msrb.mxu1 %v1959_v57 }
 0x3e5   : > { %v1204_v8 = vperm.slane %v1196_v7, %v2382_v51  ;;  %v1182_v9 = vsel %vm538_vm4, %v1181_v5, %v1163_v54  ;;  %v1962_v54 = vld [vmem:[%s2333_s15 + $0x18] sm:$0xff]  ;;  %v1294_v2 = vperm.slane %v2359_v16, 4  ;;  %v1296_v4 = vperm.slane %v2359_v16, 5 }
 0x3e6   : > { %v1211_v10 = vrot.slane %v1192_v6, 4  ;;  %v1188_v11 = vperm.slane %v1182_v9, %v2382_v51  ;;  %v1194_v12 = vsel %vm538_vm4, %v1193_v28, %v1174_v61  ;;  %v1271_v43 = vmul.f32 %v2080_v40, %v1270_v42  ;;  %1409 = vmatpush.bf16.msrb.mxu2 %v1962_v54 }
 0x3e7   : > { %v1209_v38 = vrot.slane %v1204_v8, 4  ;;  %v1200_v32 = vperm.slane %v1194_v12, %v2382_v51 }
 0x3e8   : > { %v1212_v13 = vsel %vm538_vm4, %v1204_v8, %v1211_v10  ;;  %v1207_v33 = vrot.slane %v1188_v11, 4 }
 0x3e9   : > { %1222 = vrot.lane.b32.xlu2 %v1212_v13, %s2189_s24  ;;  %v1210_v15 = vsel %vm538_vm4, %v1209_v38, %v1192_v6  ;;  %v1205_v17 = vrot.slane %v1200_v32, 4  ;;  %v1966_v13 = vld [vmem:[%s2338_s12 + $0x58] sm:$0xff] }
 0x3ea   : > { %1218 = vrot.lane.b32.xlu0 %v1210_v15, %s2190_s11  ;;  %v1208_v18 = vsel %vm538_vm4, %v1200_v32, %v1207_v33  ;;  %1410 = vmatpush.bf16.msrb.mxu2 %v1961_v58  ;;  %v1970_v33 = vld [vmem:[%s2338_s12 + $0x18] sm:$0xff] }
 0x3eb   : > { %1214 = vrot.lane.b32.xlu1 %v1208_v18, %s2191_s14  ;;  %v1206_v19 = vsel %vm538_vm4, %v1205_v17, %v1188_v11  ;;  %v1974_v15 = vld [vmem:[%s2338_s12 + $0x38] sm:$0xff]  ;;  %1462 = vmatpush.bf16.msrb.mxu3 %v1966_v13  ;;  %v1965_v17 = vld [vmem:[%s2338_s12 + $0x50] sm:$0xff] }
 0x3ec   : > { %1515 = vmatpush.bf16.msra.mxu0 %v1970_v33  ;;  %1569 = vmatpush.bf16.msra.mxu1 %v1974_v15  ;;  %v1969_v18 = vld [vmem:[%s2338_s12 + $0x10] sm:$0xff] }
 0x3ef   : > { %1463 = vmatpush.bf16.msrb.mxu3 %v1965_v17 }
 0x3f0   : > { %1516 = vmatpush.bf16.msra.mxu0 %v1969_v18 }
 0x3f1   : > { %1300 = vperm.xlu2 %2061, %v2318_v0  }
 0x3f3   : > { %1464 = vmatpush.bf16.msrb.mxu3 %v1964_v20 }
 0x3f4   : > { %1517 = vmatpush.bf16.msra.mxu0 %v1968_v21 }
 0x443   : > { %v1223_v23 = vpop.permute.xlu2 %1222 }
 0x44b   : > { %v2601_v7 = vpop.permute.xlu2 %1300 }
 0x45c   : > { %v1219_v51 = vpop.permute.xlu0 %1218 }
 0x45d   : > { %v1215_v36 = vpop.permute.xlu1 %1214 }
 0x45e   : > { %v1225_v22 = vsel %vm897_vm5, %v1206_v19, %v1215_v36  ;;  %v1973_v19 = vld [vmem:[%s2338_s12 + $0x30] sm:$0xff]  ;;  %v1963_v36 = vld [vmem:[%s2338_s12 + $0x40] sm:$0xff] }
 0x45f   : > { %v1227_v24 = vsel %vm1226_vm7, %v1225_v22, %v1219_v51  ;;  %1570 = vmatpush.bf16.msra.mxu1 %v1973_v19  ;;  %v1972_v51 = vld [vmem:[%s2338_s12 + $0x28] sm:$0xff]  ;;  %v1967_v22 = vld [vmem:[%s2338_s12] sm:$0xff]  ;;  %1465 = vmatpush.bf16.msrb.mxu3 %v1963_v36 }
 0x460   : > { %v1229_v25 = vsel %vm1228_vm8, %v1227_v24, %v1223_v23  ;;  %v1971_v23 = vld [vmem:[%s2338_s12 + $0x20] sm:$0xff]  ;;  %1518 = vmatpush.bf16.msra.mxu0 %v1967_v22  ;;  %v2625_v24 = vld [vmem:[%s2343_s18 + $0x8] sm:$0x3] }
 0x461   : > { %v1230_v26 = vpack.c.bf16 %v1229_v25, %v1229_v25  ;;  %v1310_v25 = vperm.slane %v2625_v24, 1  ;;  %v1605_v13 = vperm.slane %v2625_v24, 0 }
 0x463   : > { %1839 = vmatmul.msk.bf16.vlgmr.msra.gmra.mxu3 %vm447_vm3, %v1230_v26  ;;  %1571 = vmatpush.bf16.msra.mxu1 %v1972_v51 }
 0x467   : > { %1572 = vmatpush.bf16.msra.mxu1 %v1971_v23 }
 0x4e6   : > { %v1260_v29 = vpop.f32.mrf.mxu3 }
 0x4e7   : > { %v1261_v30 = vadd.f32 %v1260_v29, %v1235_v27 }
 0x4e9   : > { %v1264_v31 = vadd.f32 %v1261_v30, %v2352_v14  ;;  %v1272_v14 = vadd.f32 %v2080_v40, %v1271_v43 }
 0x4eb   : > { %v1265_v34 = vsel %vm447_vm3, %v1264_v31, 0.0  ;;  %v2588_v44 = vsel %vm1273_vm9, %v2080_v40, %v1272_v14 }
 0x4ec   : > { %1266 = vadd.xlane.f32.xlu0 %v1265_v34 }
 0x4ee   : > { %v1262_v35 = vpop.f32.mrf.mxu3 }
 0x55f   : > { %v1267_v45 = vpop.xlane.xlu0 %1266 }
 0x560   : > { %v1275_v46 = vmul.f32 %v2588_v44, %v1267_v45 }
 0x562   : > { %v1276_v47 = vsub.f32 %v1264_v31, %v1275_v46 }
 0x564   : > { %v1277_v48 = vmul.f32 %v1276_v47, %v1276_v47 }
 0x566   : > { %v1278_v0 = vsel %vm447_vm3, %v1277_v48, 0.0 }
 0x567   : > { %1279 = vadd.xlane.f32.xlu1 %v1278_v0 }
 0x5da   : > { %v1280_v50 = vpop.xlane.xlu1 %1279 }
 0x5db   : > { %v1281_v52 = vmul.f32 %v1280_v50, %v2588_v44  ;;  %v2085_v50 = vld [vmem:[%s2343_s18] sm:$0xff] }
 0x5dd   : > { %v1282_v56 = vadd.f32 1e-05, %v1281_v52  ;;  %v1429_v52 = vperm.slane %v2085_v50, 6 }
 0x5df   : > { %2081 = vrsqrt.f32 %v1282_v56  ;;  %vm1289_vm11 = vweird.f32 %v1282_v56 }
 0x5e5   : > { %v2082_v59 = vpop.eup %2081 }
 0x5e6   : > { %v1284_v60 = vmul.f32 %v2082_v59, %v1282_v56  ;;  %vm1290_vm10 = vweird.f32 %v2082_v59 }
 0x5e7   : > { %vm1291_vm12 = vmor %vm1289_vm11, %vm1290_vm10 }
 0x5e8   : > { %v1285_v61 = vmul.f32 %v2082_v59, %v1284_v60 }
 0x5ea   : > { %v1286_v62 = vmul.f32 0.5, %v1285_v61 }
 0x5ec   : > { %v1287_v63 = vsub.f32 1.5, %v1286_v62 }
 0x5ee   : > { %v1288_v1 = vmul.f32 %v2082_v59, %v1287_v63 }
 0x5f0   : > { %v1292_v3 = vsel %vm1291_vm12, %v2082_v59, %v1288_v1 }
 0x5f1   : > { %v1293_v5 = vmul.f32 %v1292_v3, %v1276_v47 }
 0x5f3   : > { %v1295_v6 = vmul.f32 %v1294_v2, %v1293_v5 }
 0x5f5   : > { %v2603_v28 = vadd.f32 %v1296_v4, %v1295_v6 }
 0x5f7   : > { %v1303_v8 = vmul.f32 %v2601_v7, %v2603_v28 }
 0x5f9   : > { %v1304_v9 = vpack.c.bf16 %v1303_v8, %v1303_v8  ;;  %v1340_v10 = vrot.slane %v1303_v8, 6  ;;  %v1378_v11 = vrot.slane %v1303_v8, 7 }
 0x5fb   : > { %v1343_v16 = vsel %vm1342_vm13, 0.0, %v1340_v10  ;;  %v1381_v12 = vsel %vm1380_vm14, 0.0, %v1378_v11  ;;  %1852 = vmatmul.msk.bf16.vlgmr.msrb.gmra.mxu0 %vm447_vm3, %v1304_v9 }
 0x5fc   : > { %v1344_v38 = vpack.c.bf16 %v1343_v16, %v1343_v16  ;;  %v1382_v32 = vpack.c.bf16 %v1381_v12, %v1381_v12 }
 0x5fe   : > { %1861 = vmatmul.msk.bf16.vlgmr.msrb.gmra.mxu1 %vm447_vm3, %v1344_v38  ;;  %1874 = vmatmul.msk.bf16.vlgmr.msrb.gmra.mxu2 %vm447_vm3, %v1382_v32  ;;  %v1603_v38 = vperm.slane %v2085_v50, 7 }
 0x678   : > { %v1335_v26 = vpop.f32.mrf.mxu0 }
 0x679   : > { %v1336_v29 = vadd.f32 %v1335_v26, %v1310_v25 }
 0x67b   : > { %v1373_v27 = vpop.f32.mrf.mxu1 }
 0x67c   : > { %v1377_v30 = vadd.f32 %v1373_v27, %v1336_v29 }
 0x680   : > { %v1337_v31 = vpop.f32.mrf.mxu0 }
 0x681   : > { %v1412_v34 = vpop.f32.mrf.mxu2 }
 0x682   : > { %v1416_v35 = vadd.f32 %v1412_v34, %v1377_v30 }
 0x683   : > { %v1375_v37 = vpop.f32.mrf.mxu1 }
 0x684   : > { %v1417_v39 = vmax.f32 %v1416_v35, 0.0 }
 0x686   : > { %v1418_v40 = vmul.f32 %v1417_v39, %v2601_v7 }
 0x688   : > { %v1419_v41 = vpack.c.bf16 %v1418_v40, %v1418_v40  ;;  %v1472_v42 = vrot.slane %v1418_v40, 6  ;;  %v1525_v43 = vrot.slane %v1418_v40, 7 }
 0x689   : > { %v1414_v14 = vpop.f32.mrf.mxu2 }
 0x68a   : > { %v1474_v45 = vsel %vm1342_vm13, 0.0, %v1472_v42  ;;  %v1527_v46 = vsel %vm1380_vm14, 0.0, %v1525_v43  ;;  %1899 = vmatmul.msk.bf16.vlgmr.msrb.gmra.mxu3 %vm1454_vm15, %v1419_v41 }
 0x68b   : > { %v1475_v47 = vpack.c.bf16 %v1474_v45, %v1474_v45  ;;  %v1528_v48 = vpack.c.bf16 %v1527_v46, %v1527_v46 }
 0x68d   : > { %1916 = vmatmul.msk.bf16.vlgmr.msra.gmra.mxu0 %vm1454_vm15, %v1475_v47  ;;  %1941 = vmatmul.msk.bf16.vlgmr.msra.gmra.mxu1 %vm1454_vm15, %v1528_v48 }
 0x70a   : > { %v1520_v0 = vpop.f32.mrf.mxu0  ;;  %v1574_v49 = vpop.f32.mrf.mxu1 }
 0x70d   : > { %v1467_v53 = vpop.f32.mrf.mxu3 }
 0x70e   : > { %v1468_v54 = vadd.f32 %v1467_v53, %v1429_v52 }
 0x710   : > { %v1524_v55 = vadd.f32 %v1520_v0, %v1468_v54 }
 0x712   : > { %v1578_v56 = vadd.f32 %v1574_v49, %v1524_v55  ;;  %v1522_v57 = vpop.f32.mrf.mxu0  ;;  %v1576_v58 = vpop.f32.mrf.mxu1 }
 0x714   : > { %v1579_v59 = vmul.f32 %v1578_v56, %v2601_v7 }
 0x715   : > { %v1469_v60 = vpop.f32.mrf.mxu3 }
 0x716   : > { %v1580_v61 = vadd.f32 %v1579_v59, %v2603_v28 }
 0x718   : > { %v1581_v62 = vsel %vm447_vm3, %v1580_v61, 0.0 }
 0x719   : > { %1582 = vadd.xlane.f32.xlu2 %v1581_v62 }
 0x78c   : > { %v1583_v63 = vpop.xlane.xlu2 %1582 }
 0x78d   : > { %v1584_v1 = vmul.f32 %v1583_v63, %v2588_v44 }
 0x78f   : > { %v1585_v2 = vsub.f32 %v1580_v61, %v1584_v1 }
 0x791   : > { %v1586_v3 = vmul.f32 %v1585_v2, %v1585_v2 }
 0x793   : > { %v1587_v4 = vsel %vm447_vm3, %v1586_v3, 0.0 }
 0x794   : > { %1588 = vadd.xlane.f32.xlu0 %v1587_v4 }
 0x807   : > { %v1589_v5 = vpop.xlane.xlu0 %1588 }
 0x808   : > { %v1590_v6 = vmul.f32 %v1589_v5, %v2588_v44 }
 0x80a   : > { %v1591_v8 = vadd.f32 1e-05, %v1590_v6 }
 0x80c   : > { %2083 = vrsqrt.f32 %v1591_v8  ;;  %vm1598_vm1 = vweird.f32 %v1591_v8 }
 0x812   : > { %v2084_v9 = vpop.eup %2083 }
 0x813   : > { %v1593_v10 = vmul.f32 %v2084_v9, %v1591_v8  ;;  %vm1599_vm0 = vweird.f32 %v2084_v9 }
 0x814   : > { %vm1600_vm2 = vmor %vm1598_vm1, %vm1599_vm0 }
 0x815   : > { %v1594_v11 = vmul.f32 %v2084_v9, %v1593_v10 }
 0x817   : > { %v1595_v28 = vmul.f32 0.5, %v1594_v11 }
 0x819   : > { %v1596_v16 = vsub.f32 1.5, %v1595_v28 }
 0x81b   : > { %v1597_v12 = vmul.f32 %v2084_v9, %v1596_v16 }
 0x81d   : > { %v1601_v32 = vsel %vm1600_vm2, %v2084_v9, %v1597_v12 }
 0x81e   : > { %v1602_v33 = vmul.f32 %v1601_v32, %v1585_v2 }
 0x820   : > { %v1604_v15 = vmul.f32 %v1603_v38, %v1602_v33  ;;  %1611 = sbr.rel (%p1942_p1) target bundleno = 2088 (0x828), region = 56 }
 0x822   : > { %v1606_v17 = vadd.f32 %v1605_v13, %v1604_v15 }
 0x824   : > { %1607 = vst.msk [vmem:[#allocation2] sm:$0xff] %vm447_vm3, %v1606_v17 }
 0x825   : > { %v1612_v44 = vmul.f32 %v1606_v17, %v2601_v7 }
 0x827   : > { %1613 = vst.msk [vmem:[%s369_s21] sm:$0xff] %vm447_vm3, %v1612_v44 }
 0x828 PF: > { %s1944_s17 = sshll.u32 %s2168_s28, 3  ;;  %s1627_s9 = sshll.u32 %s369_s21, 4  ;;  %s1628_s9 = int_to_ptr.vmem [resolvable:$true] %s1627_s9 }
 0x829   : > { %s1625_s23 = scalar_lea.hbm %s2698_s7, %s1944_s17  ;;  %s2718_s15 = sand.u32 1, %s2156_s25  }
 0x82a   : > { %s1629_s27 = sshll.u32 %s1625_s23, 4  ;;  %s1615_s22 = scalar_lea.sflag [#allocation5], %s2718_s15  ;;  %s1630_s27 = int_to_ptr.hbm [resolvable:$true] %s1629_s27 }
 0x82b   : > { %s2100_s16 = sshra.s32 %s1630_s27, 4  ;;  %s2106_s18 = scalar_lea.hbm %s2698_s7, 16  ;;  %s2101_s16 = int_to_ptr.hbm [resolvable:$true] %s2100_s16 }
 0x82c   : > { %s2102_s12 = scalar_lea.hbm %s2101_s16, 8  ;;  %p2107_p6 = scmp.lt.s32.totalorder %s2101_s16, %s2698_s7 }
 0x82d   : > { %p2103_p2 = scmp.ne.s32.totalorder %s2101_s16, %s2102_s12  ;;  %p2108_p7 = scmp.lt.s32.totalorder %s2106_s18, %s2102_s12 }
 0x82f   : > { %p2104_p4 = pnand %p2103_p2, %p2283_p3  ;;  %p2109_p8 = por %p2108_p7, %p2107_p6 }
 0x831   : > { %p2105_p5 = pneg %p2104_p4 }
 0x833   : > { %p2110_p10 = pnand %p2109_p8, %p2105_p5 }
 0x835   : > { %2113 = shalt.err (!%p2110_p10)
}
 0x836   : > { %1977 = dma.vmem_to_hbm [thread:$0]  (%p2283_p3), %s1628_s9, 128, %s1630_s27, %s1615_s22  }
 0x837 PF: > { %s2719_s19 = sld [smem:[#allocation7_spill]]  ;;  %p1983_p11 = scmp.ge.s32.totalorder %s2180_s8, 2 }
 0x839   : > { %p1980_p12 = pnand %p1983_p11, %p2293_p9 }
 0x83b   : > { %p1981_p13 = pneg %p1980_p12 }
 0x83d   : > { %s1641_s30 = sand.u32 1, %s2719_s19  }
 0x83e   : > { %s1642_s24 = scalar_lea.sflag [#allocation5], %s1641_s30 }
 0x83f   : > { %2147 = dma.done.wait (%p1981_p13), %s1642_s24, 128  }
 0x840   : > { %2149 = vsyncadd (%p1981_p13), %s1642_s24, 4294967168  ;;  %s20_s8 = sadd.s32 1, %s2180_s8   ;;  %s2721_s11 = sld [smem:[#allocation8_spill]] }
 0x841   : > { %p17_p0 = scmp.ge.s32.totalorder %s20_s8, 6   ;;  %s2722_s26 = sld [smem:[#allocation14_spill]] }
 0x842   : > { %s2723_s27 = sld [smem:[#allocation9_spill]]  ;;  %s2727_s24 = smov %s2156_s25 }
 0x843   : > { %s2724_s28 = sld [smem:[#allocation10_spill]]  ;;  %19 = sbr.rel (!%p17_p0) target bundleno = 7 (0x7), region = 115 }
 0x844   : > { %s2725_s29 = sld [smem:[#allocation11_spill]] }
 0x845   : > { %s2726_s30 = sld [smem:[#allocation12_spill]] }
 0x846   : > { %s2728_s25 = smov %s2721_s11 }
 0x848   :  { %1648 = vsyncpa [#allocation5], 1 }
 0x849   :  { %1650 = vsyncpa [#allocation5 + $0x1], 1 }

</bundles_post_ra>
